<compile_context>
chip_gen: v6e
topology: v6e:2x2x1
jax: 0.10.0
libtpu: 0.0.40
codegen_flags: <defaults>
</compile_context>

<pallas_src>
import math
import functools

import jax
import jax.numpy as jnp
from jax.experimental import pallas as pl
from jax.experimental.pallas import tpu as pltpu


def _mha_kernel(has_mask, g, n_hg, *refs):
    """One grid step = (batch b, query tile qi, head group hg) -> g heads."""
    if has_mask:
        (q_ref, k_ref, v_ref, mask_ref,
         wq_ref, bq_ref, wk_ref, bk_ref, wv_ref, bv_ref, wo_ref, bo_ref,
         o_ref, kc_ref, vc_ref, acc_ref) = refs
    else:
        (q_ref, k_ref, v_ref,
         wq_ref, bq_ref, wk_ref, bk_ref, wv_ref, bv_ref, wo_ref, bo_ref,
         o_ref, kc_ref, vc_ref, acc_ref) = refs
        mask_ref = None

    f32, bf16 = jnp.float32, jnp.bfloat16
    qi = pl.program_id(1)
    hg = pl.program_id(2)
    h = kc_ref.shape[0]

    # ---- once per batch: project K and V for ALL heads into the VMEM cache.
    @pl.when(jnp.logical_and(qi == 0, hg == 0))
    def _fill_kv_cache():
        xk = k_ref[0]                                          # (S, D) bf16
        xv = v_ref[0]
        for i in range(h):                                     # static unroll
            kh = jnp.dot(xk, wk_ref[i], preferred_element_type=f32) + bk_ref[i]
            vh = jnp.dot(xv, wv_ref[i], preferred_element_type=f32) + bv_ref[i]
            kc_ref[i] = kh.astype(bf16)                        # (S, d_k)
            vc_ref[i] = vh.astype(bf16)

    xq = q_ref[0]                                              # (tq, D) bf16
    neg = (mask_ref[0] == 0) if has_mask else None             # hoisted (tq, S)

    base = hg * g
    local = None                                               # (tq, Dp) f32
    for i in range(g):
        head = base + i
        # Q projection for this head (1/sqrt(d_k) folded into wq/bq).
        qh = jnp.dot(xq, wq_ref[head], preferred_element_type=f32) + bq_ref[head]
        kh = kc_ref[head]                                      # (S, d_k) bf16
        vh = vc_ref[head]                                      # (S, d_k) bf16

        s = jnp.einsum('qd,kd->qk', qh.astype(bf16), kh,
                       preferred_element_type=f32)             # (tq, S)
        if has_mask:
            s = jnp.where(neg, -1e9, s)                        # masked_fill(mask==0)

        # Numerically stable softmax; normalization deferred past PV matmul.
        m = jnp.max(s, axis=-1, keepdims=True)
        e = jnp.exp(s - m)
        den = jnp.sum(e, axis=-1, keepdims=True)               # (tq, 1)

        o_h = jnp.dot(e.astype(bf16), vh, preferred_element_type=f32)
        o_h = o_h * pl.reciprocal(den, approx=True)            # (tq, d_k)

        # This head's contribution to the output projection, accumulated in
        # registers; a single acc_ref update per grid step.
        c = jnp.dot(o_h.astype(bf16), wo_ref[head], preferred_element_type=f32)
        local = c if local is None else local + c              # (tq, Dp)

    if n_hg == 1:
        o_ref[0] = (local + bo_ref[...]).astype(o_ref.dtype)
    else:
        @pl.when(hg == 0)
        def _init():
            acc_ref[...] = local

        @pl.when(hg > 0)
        def _accum():
            acc_ref[...] += local

        @pl.when(hg == n_hg - 1)
        def _finalize():
            o_ref[0] = (acc_ref[...] + bo_ref[...]).astype(o_ref.dtype)


def _vmem_capacity_bytes():
    """Physical per-core VMEM (fallback 64 MiB if the query fails)."""
    try:
        info = pltpu.get_tpu_info()
        cap = getattr(info, "vmem_capacity_bytes", None)
        if cap:
            return int(cap)
    except Exception:
        pass
    return 64 * 1024 * 1024


def _choose_q_tile(seq_len, max_tile):
    """Largest query tile <= max_tile that divides S (multiple of 8 if tiled)."""
    if seq_len <= max_tile:
        return seq_len
    t = (max_tile // 8) * 8
    while t >= 8:
        if seq_len % t == 0:
            return t
        t -= 8
    # TODO(synk): prime-ish S falls back to a full-sequence tile (VMEM risk).
    return seq_len


def multi_headed_attention(query, key, value, params, h, mask=None):
    """Pallas forward of MultiHeadedAttention.  query/key/value: (B, S, D)."""
    B, S, D = query.shape
    assert D % h == 0
    d_k = D // h
    wq, bq, wk, bk, wv, bv, wo, bo = params

    # Per-generation budgets (v7x has 64 MiB physical VMEM per core).
    vmem_cap = _vmem_capacity_bytes()
    vmem_limit = min(vmem_cap * 3 // 4, 100 * 1024 * 1024)
    max_q_tile = 256 if vmem_cap <= 64 * 1024 * 1024 else 512

    tq = _choose_q_tile(S, max_q_tile)
    n_q = S // tq

    # Head grouping: target ~128-wide work per step, g must divide h.
    g = max(1, min(h, 128 // max(1, d_k)))
    while h % g:
        g -= 1
    n_hg = h // g

    scale = 1.0 / math.sqrt(d_k)
    Dp = ((D + 127) // 128) * 128            # lane-dense output width
    bf16 = jnp.bfloat16

    # nn.Linear: y = x @ W^T + b.  Pre-transpose to (in, out), fold the score
    # scale into the Q projection, split Q/K/V weights into per-head column
    # blocks (h, D, d_k) and Wo into per-head row blocks (h, d_k, Dp) (Wo/bo
    # zero-padded to Dp).  Weights bf16 (MXU-native); biases f32.
    wq_h = ((wq.T * scale).reshape(D, h, d_k).transpose(1, 0, 2)).astype(bf16)
    wk_h = (wk.T.reshape(D, h, d_k).transpose(1, 0, 2)).astype(bf16)
    wv_h = (wv.T.reshape(D, h, d_k).transpose(1, 0, 2)).astype(bf16)
    woT = wo.T
    bo_p = bo
    if Dp != D:
        woT = jnp.pad(woT, ((0, 0), (0, Dp - D)))
        bo_p = jnp.pad(bo, (0, Dp - D))
    wo_h = woT.reshape(h, d_k, Dp).astype(bf16)
    bq_h = (bq * scale).reshape(h, 1, d_k).astype(jnp.float32)
    bk_h = bk.reshape(h, 1, d_k).astype(jnp.float32)
    bv_h = bv.reshape(h, 1, d_k).astype(jnp.float32)
    bo_2 = bo_p.reshape(1, Dp).astype(jnp.float32)

    out_dtype = query.dtype
    qb, kb, vb = (x.astype(bf16) for x in (query, key, value))   # bf16 inputs

    const3 = lambda b, qi, hg: (0, 0, 0)
    const2 = lambda b, qi, hg: (0, 0)
    q_spec = pl.BlockSpec((1, tq, D), lambda b, qi, hg: (b, qi, 0))
    kv_spec = pl.BlockSpec((1, S, D), lambda b, qi, hg: (b, 0, 0))
    out_spec = pl.BlockSpec((1, tq, Dp), lambda b, qi, hg: (b, qi, 0))
    wqkv_spec = pl.BlockSpec((h, D, d_k), const3)    # whole stack, DMA'd once
    bqkv_spec = pl.BlockSpec((h, 1, d_k), const3)
    wo_spec = pl.BlockSpec((h, d_k, Dp), const3)
    bo_spec = pl.BlockSpec((1, Dp), const2)
    mask_spec = pl.BlockSpec((1, tq, S), lambda b, qi, hg: (b, qi, 0))

    has_mask = mask is not None
    kernel = functools.partial(_mha_kernel, has_mask, g, n_hg)

    args = [qb, kb, vb]
    in_specs = [q_spec, kv_spec, kv_spec]
    if has_mask:
        args.append((mask != 0).astype(jnp.int8))    # compact int8 mask
        in_specs.append(mask_spec)
    args += [wq_h, bq_h, wk_h, bk_h, wv_h, bv_h, wo_h, bo_2]
    in_specs += [wqkv_spec, bqkv_spec, wqkv_spec, bqkv_spec,
                 wqkv_spec, bqkv_spec, wo_spec, bo_spec]

    out = pl.pallas_call(
        kernel,
        out_shape=jax.ShapeDtypeStruct((B, S, Dp), out_dtype),
        grid_spec=pltpu.PrefetchScalarGridSpec(
            num_scalar_prefetch=0,
            grid=(B, n_q, n_hg),
            in_specs=in_specs,
            out_specs=out_spec,
            scratch_shapes=[
                pltpu.VMEM((h, S, d_k), bf16),       # K projection cache (all heads)
                pltpu.VMEM((h, S, d_k), bf16),       # V projection cache (all heads)
                pltpu.VMEM((tq, Dp), jnp.float32),   # head-group output accumulator
            ],
        ),
        compiler_params=pltpu.CompilerParams(
            # qi must be sequential: the K/V VMEM cache is carried across
            # query tiles of the same batch.
            dimension_semantics=("parallel", "arbitrary", "arbitrary"),
            vmem_limit_bytes=int(vmem_limit)),
    )(*args)

    return out if Dp == D else out[..., :D]


def init_params(key, d_model):
    """Deterministic synthetic init of the 4 nn.Linear(d_model, d_model)."""
    keys = jax.random.split(key, 8)
    scale = 1.0 / math.sqrt(d_model)
    ws, bs = [], []
    for i in range(4):
        ws.append(jax.random.uniform(keys[2 * i], (d_model, d_model),
                                     jnp.float32, -scale, scale))
        bs.append(jax.random.uniform(keys[2 * i + 1], (d_model,),
                                     jnp.float32, -scale, scale))
    return (ws[0], bs[0], ws[1], bs[1], ws[2], bs[2], ws[3], bs[3])


def ref_mha(q, k, v, params, h, mask=None):
    """Pure-JAX f32 reference mirroring the PyTorch forward exactly."""
    wq, bq, wk, bk, wv, bv, wo, bo = params
    B, S, D = q.shape
    d_k = D // h
    lin = lambda x, w, b: x @ w.T + b
    Q = lin(q, wq, bq).reshape(B, S, h, d_k).transpose(0, 2, 1, 3)
    K = lin(k, wk, bk).reshape(B, S, h, d_k).transpose(0, 2, 1, 3)
    V = lin(v, wv, bv).reshape(B, S, h, d_k).transpose(0, 2, 1, 3)
    scores = jnp.einsum('bhqd,bhkd->bhqk', Q, K) / math.sqrt(d_k)
    if mask is not None:
        scores = jnp.where(mask[:, None] == 0, -1e9, scores)
    p = jax.nn.softmax(scores, axis=-1)
    o = jnp.einsum('bhqk,bhkd->bhqd', p, V)
    o = o.transpose(0, 2, 1, 3).reshape(B, S, D)
    return lin(o, wo, bo)


if __name__ == "__main__":
    B, S, D, H = 2, 8, 32, 4  # batch, seq, d_model, heads

    root = jax.random.PRNGKey(0)
    kq, kk, kv, kp = jax.random.split(root, 4)
    query = jax.random.normal(kq, (B, S, D), jnp.float32)
    key_in = jax.random.normal(kk, (B, S, D), jnp.float32)
    value = jax.random.normal(kv, (B, S, D), jnp.float32)
    params = init_params(kp, D)

    # no-mask path: mask input and masked_fill are skipped entirely.
    out = jax.block_until_ready(
        multi_headed_attention(query, key_in, value, params, H, mask=None))
    ref = ref_mha(query, key_in, value, params, H, mask=None)
    assert out.shape == (B, S, D)
    # bf16 MXU operands with f32 accumulation -> slightly loosened tolerance.
    assert jnp.allclose(out, ref, atol=3e-2, rtol=3e-2), "no-mask mismatch"

    # masked path: compact int8 mask (causal lower-triangular).
    mask = jnp.broadcast_to(jnp.tril(jnp.ones((S, S), jnp.float32)), (B, S, S))
    out_m = jax.block_until_ready(
        multi_headed_attention(query, key_in, value, params, H, mask=mask))
    ref_m = ref_mha(query, key_in, value, params, H, mask=mask)
    assert jnp.allclose(out_m, ref_m, atol=3e-2, rtol=3e-2), "masked mismatch"

    print("KERNEL_OK")
</pallas_src>

<mosaic_0001>
module attributes {stable_mosaic.version = 11 : i64} {
  func.func @_mha_kernel(%arg0: i32, %arg1: i32, %arg2: i32, %arg3: memref<1x8x32xbf16, #tpu.memory_space<vmem>>, %arg4: memref<1x8x32xbf16, #tpu.memory_space<vmem>>, %arg5: memref<1x8x32xbf16, #tpu.memory_space<vmem>>, %arg6: memref<4x32x8xbf16, #tpu.memory_space<vmem>>, %arg7: memref<4x1x8xf32, #tpu.memory_space<vmem>>, %arg8: memref<4x32x8xbf16, #tpu.memory_space<vmem>>, %arg9: memref<4x1x8xf32, #tpu.memory_space<vmem>>, %arg10: memref<4x32x8xbf16, #tpu.memory_space<vmem>>, %arg11: memref<4x1x8xf32, #tpu.memory_space<vmem>>, %arg12: memref<4x8x128xbf16, #tpu.memory_space<vmem>>, %arg13: memref<1x128xf32, #tpu.memory_space<vmem>>, %arg14: memref<1x8x128xf32, #tpu.memory_space<vmem>>, %arg15: memref<4x8x8xbf16, #tpu.memory_space<vmem>>, %arg16: memref<4x8x8xbf16, #tpu.memory_space<vmem>>, %arg17: memref<8x128xf32, #tpu.memory_space<vmem>>) attributes {dimension_semantics = [#tpu.dimension_semantics<parallel>, #tpu.dimension_semantics<arbitrary>, #tpu.dimension_semantics<arbitrary>], iteration_bounds = array<i64: 2, 1, 1>, scalar_prefetch = 0 : i64, scratch_operands = 3 : i64, tpu.core_type = #tpu.core_type<tc>, window_params = [{transform_indices = @transform_0, window_bounds = array<i64: 1, 8, 32>}, {transform_indices = @transform_1, window_bounds = array<i64: 1, 8, 32>}, {transform_indices = @transform_2, window_bounds = array<i64: 1, 8, 32>}, {pipeline_mode = #tpu.pipeline_mode<synchronous>, transform_indices = @transform_3, window_bounds = array<i64: 4, 32, 8>}, {pipeline_mode = #tpu.pipeline_mode<synchronous>, transform_indices = @transform_4, window_bounds = array<i64: 4, 1, 8>}, {pipeline_mode = #tpu.pipeline_mode<synchronous>, transform_indices = @transform_5, window_bounds = array<i64: 4, 32, 8>}, {pipeline_mode = #tpu.pipeline_mode<synchronous>, transform_indices = @transform_6, window_bounds = array<i64: 4, 1, 8>}, {pipeline_mode = #tpu.pipeline_mode<synchronous>, transform_indices = @transform_7, window_bounds = array<i64: 4, 32, 8>}, {pipeline_mode = #tpu.pipeline_mode<synchronous>, transform_indices = @transform_8, window_bounds = array<i64: 4, 1, 8>}, {pipeline_mode = #tpu.pipeline_mode<synchronous>, transform_indices = @transform_9, window_bounds = array<i64: 4, 8, 128>}, {pipeline_mode = #tpu.pipeline_mode<synchronous>, transform_indices = @transform_10, window_bounds = array<i64: 1, 128>}, {transform_indices = @transform_11, window_bounds = array<i64: 1, 8, 128>}]} {
    %c0_i32 = arith.constant 0 : i32
    %0 = arith.cmpi eq, %arg1, %c0_i32 : i32
    %c0_i32_0 = arith.constant 0 : i32
    %1 = arith.cmpi eq, %arg2, %c0_i32_0 : i32
    %2 = arith.andi %0, %1 : i1
    %3 = arith.extui %2 : i1 to i32
    %c0_i32_1 = arith.constant 0 : i32
    %4 = arith.cmpi ne, %3, %c0_i32_1 : i32
    scf.if %4 {
      %c0_73 = arith.constant 0 : index
      %c0_74 = arith.constant 0 : index
      %c0_75 = arith.constant 0 : index
      %157 = vector.load %arg4[%c0_73, %c0_74, %c0_75] : memref<1x8x32xbf16, #tpu.memory_space<vmem>>, vector<1x8x32xbf16>
      %158 = vector.shape_cast %157 : vector<1x8x32xbf16> to vector<8x32xbf16>
      %c0_76 = arith.constant 0 : index
      %c0_77 = arith.constant 0 : index
      %c0_78 = arith.constant 0 : index
      %159 = vector.load %arg5[%c0_76, %c0_77, %c0_78] : memref<1x8x32xbf16, #tpu.memory_space<vmem>>, vector<1x8x32xbf16>
      %160 = vector.shape_cast %159 : vector<1x8x32xbf16> to vector<8x32xbf16>
      %c0_79 = arith.constant 0 : index
      %c0_80 = arith.constant 0 : index
      %c0_81 = arith.constant 0 : index
      %161 = vector.load %arg8[%c0_79, %c0_80, %c0_81] : memref<4x32x8xbf16, #tpu.memory_space<vmem>>, vector<1x32x8xbf16>
      %162 = vector.shape_cast %161 : vector<1x32x8xbf16> to vector<32x8xbf16>
      %cst_82 = arith.constant dense<0.000000e+00> : vector<8x8xf32>
      %163 = tpu.matmul %158, %162, %cst_82 {dimension_numbers = #tpu.dot_dimension_numbers<[1], [0], [0], [1], [0, 0, 1, 1], [], []>} : vector<8x32xbf16>, vector<32x8xbf16>, vector<8x8xf32> -> vector<8x8xf32>
      %c0_83 = arith.constant 0 : index
      %c0_84 = arith.constant 0 : index
      %c0_85 = arith.constant 0 : index
      %164 = vector.load %arg9[%c0_83, %c0_84, %c0_85] : memref<4x1x8xf32, #tpu.memory_space<vmem>>, vector<1x1x8xf32>
      %165 = vector.shape_cast %164 : vector<1x1x8xf32> to vector<1x8xf32>
      %166 = vector.broadcast %165 : vector<1x8xf32> to vector<8x8xf32>
      %167 = arith.addf %163, %166 : vector<8x8xf32>
      %c0_86 = arith.constant 0 : index
      %c0_87 = arith.constant 0 : index
      %c0_88 = arith.constant 0 : index
      %168 = vector.load %arg10[%c0_86, %c0_87, %c0_88] : memref<4x32x8xbf16, #tpu.memory_space<vmem>>, vector<1x32x8xbf16>
      %169 = vector.shape_cast %168 : vector<1x32x8xbf16> to vector<32x8xbf16>
      %cst_89 = arith.constant dense<0.000000e+00> : vector<8x8xf32>
      %170 = tpu.matmul %160, %169, %cst_89 {dimension_numbers = #tpu.dot_dimension_numbers<[1], [0], [0], [1], [0, 0, 1, 1], [], []>} : vector<8x32xbf16>, vector<32x8xbf16>, vector<8x8xf32> -> vector<8x8xf32>
      %c0_90 = arith.constant 0 : index
      %c0_91 = arith.constant 0 : index
      %c0_92 = arith.constant 0 : index
      %171 = vector.load %arg11[%c0_90, %c0_91, %c0_92] : memref<4x1x8xf32, #tpu.memory_space<vmem>>, vector<1x1x8xf32>
      %172 = vector.shape_cast %171 : vector<1x1x8xf32> to vector<1x8xf32>
      %173 = vector.broadcast %172 : vector<1x8xf32> to vector<8x8xf32>
      %174 = arith.addf %170, %173 : vector<8x8xf32>
      %175 = arith.truncf %167 : vector<8x8xf32> to vector<8x8xbf16>
      %c0_93 = arith.constant 0 : index
      %c0_94 = arith.constant 0 : index
      %c0_95 = arith.constant 0 : index
      %176 = vector.load %arg15[%c0_93, %c0_94, %c0_95] : memref<4x8x8xbf16, #tpu.memory_space<vmem>>, vector<1x8x8xbf16>
      %177 = vector.shape_cast %176 : vector<1x8x8xbf16> to vector<8x8xbf16>
      %178 = vector.shape_cast %175 : vector<8x8xbf16> to vector<1x8x8xbf16>
      tpu.vector_store %arg15[%c0_93, %c0_94, %c0_95], %178 {strides = array<i32>} : memref<4x8x8xbf16, #tpu.memory_space<vmem>>, vector<1x8x8xbf16>,
      %179 = arith.truncf %174 : vector<8x8xf32> to vector<8x8xbf16>
      %c0_96 = arith.constant 0 : index
      %c0_97 = arith.constant 0 : index
      %c0_98 = arith.constant 0 : index
      %180 = vector.load %arg16[%c0_96, %c0_97, %c0_98] : memref<4x8x8xbf16, #tpu.memory_space<vmem>>, vector<1x8x8xbf16>
      %181 = vector.shape_cast %180 : vector<1x8x8xbf16> to vector<8x8xbf16>
      %182 = vector.shape_cast %179 : vector<8x8xbf16> to vector<1x8x8xbf16>
      tpu.vector_store %arg16[%c0_96, %c0_97, %c0_98], %182 {strides = array<i32>} : memref<4x8x8xbf16, #tpu.memory_space<vmem>>, vector<1x8x8xbf16>,
      %c1 = arith.constant 1 : index
      %c0_99 = arith.constant 0 : index
      %c0_100 = arith.constant 0 : index
      %183 = vector.load %arg8[%c1, %c0_99, %c0_100] : memref<4x32x8xbf16, #tpu.memory_space<vmem>>, vector<1x32x8xbf16>
      %184 = vector.shape_cast %183 : vector<1x32x8xbf16> to vector<32x8xbf16>
      %cst_101 = arith.constant dense<0.000000e+00> : vector<8x8xf32>
      %185 = tpu.matmul %158, %184, %cst_101 {dimension_numbers = #tpu.dot_dimension_numbers<[1], [0], [0], [1], [0, 0, 1, 1], [], []>} : vector<8x32xbf16>, vector<32x8xbf16>, vector<8x8xf32> -> vector<8x8xf32>
      %c1_102 = arith.constant 1 : index
      %c0_103 = arith.constant 0 : index
      %c0_104 = arith.constant 0 : index
      %186 = vector.load %arg9[%c1_102, %c0_103, %c0_104] : memref<4x1x8xf32, #tpu.memory_space<vmem>>, vector<1x1x8xf32>
      %187 = vector.shape_cast %186 : vector<1x1x8xf32> to vector<1x8xf32>
      %188 = vector.broadcast %187 : vector<1x8xf32> to vector<8x8xf32>
      %189 = arith.addf %185, %188 : vector<8x8xf32>
      %c1_105 = arith.constant 1 : index
      %c0_106 = arith.constant 0 : index
      %c0_107 = arith.constant 0 : index
      %190 = vector.load %arg10[%c1_105, %c0_106, %c0_107] : memref<4x32x8xbf16, #tpu.memory_space<vmem>>, vector<1x32x8xbf16>
      %191 = vector.shape_cast %190 : vector<1x32x8xbf16> to vector<32x8xbf16>
      %cst_108 = arith.constant dense<0.000000e+00> : vector<8x8xf32>
      %192 = tpu.matmul %160, %191, %cst_108 {dimension_numbers = #tpu.dot_dimension_numbers<[1], [0], [0], [1], [0, 0, 1, 1], [], []>} : vector<8x32xbf16>, vector<32x8xbf16>, vector<8x8xf32> -> vector<8x8xf32>
      %c1_109 = arith.constant 1 : index
      %c0_110 = arith.constant 0 : index
      %c0_111 = arith.constant 0 : index
      %193 = vector.load %arg11[%c1_109, %c0_110, %c0_111] : memref<4x1x8xf32, #tpu.memory_space<vmem>>, vector<1x1x8xf32>
      %194 = vector.shape_cast %193 : vector<1x1x8xf32> to vector<1x8xf32>
      %195 = vector.broadcast %194 : vector<1x8xf32> to vector<8x8xf32>
      %196 = arith.addf %192, %195 : vector<8x8xf32>
      %197 = arith.truncf %189 : vector<8x8xf32> to vector<8x8xbf16>
      %c1_112 = arith.constant 1 : index
      %c0_113 = arith.constant 0 : index
      %c0_114 = arith.constant 0 : index
      %198 = vector.load %arg15[%c1_112, %c0_113, %c0_114] : memref<4x8x8xbf16, #tpu.memory_space<vmem>>, vector<1x8x8xbf16>
      %199 = vector.shape_cast %198 : vector<1x8x8xbf16> to vector<8x8xbf16>
      %200 = vector.shape_cast %197 : vector<8x8xbf16> to vector<1x8x8xbf16>
      tpu.vector_store %arg15[%c1_112, %c0_113, %c0_114], %200 {strides = array<i32>} : memref<4x8x8xbf16, #tpu.memory_space<vmem>>, vector<1x8x8xbf16>,
      %201 = arith.truncf %196 : vector<8x8xf32> to vector<8x8xbf16>
      %c1_115 = arith.constant 1 : index
      %c0_116 = arith.constant 0 : index
      %c0_117 = arith.constant 0 : index
      %202 = vector.load %arg16[%c1_115, %c0_116, %c0_117] : memref<4x8x8xbf16, #tpu.memory_space<vmem>>, vector<1x8x8xbf16>
      %203 = vector.shape_cast %202 : vector<1x8x8xbf16> to vector<8x8xbf16>
      %204 = vector.shape_cast %201 : vector<8x8xbf16> to vector<1x8x8xbf16>
      tpu.vector_store %arg16[%c1_115, %c0_116, %c0_117], %204 {strides = array<i32>} : memref<4x8x8xbf16, #tpu.memory_space<vmem>>, vector<1x8x8xbf16>,
      %c2 = arith.constant 2 : index
      %c0_118 = arith.constant 0 : index
      %c0_119 = arith.constant 0 : index
      %205 = vector.load %arg8[%c2, %c0_118, %c0_119] : memref<4x32x8xbf16, #tpu.memory_space<vmem>>, vector<1x32x8xbf16>
      %206 = vector.shape_cast %205 : vector<1x32x8xbf16> to vector<32x8xbf16>
      %cst_120 = arith.constant dense<0.000000e+00> : vector<8x8xf32>
      %207 = tpu.matmul %158, %206, %cst_120 {dimension_numbers = #tpu.dot_dimension_numbers<[1], [0], [0], [1], [0, 0, 1, 1], [], []>} : vector<8x32xbf16>, vector<32x8xbf16>, vector<8x8xf32> -> vector<8x8xf32>
      %c2_121 = arith.constant 2 : index
      %c0_122 = arith.constant 0 : index
      %c0_123 = arith.constant 0 : index
      %208 = vector.load %arg9[%c2_121, %c0_122, %c0_123] : memref<4x1x8xf32, #tpu.memory_space<vmem>>, vector<1x1x8xf32>
      %209 = vector.shape_cast %208 : vector<1x1x8xf32> to vector<1x8xf32>
      %210 = vector.broadcast %209 : vector<1x8xf32> to vector<8x8xf32>
      %211 = arith.addf %207, %210 : vector<8x8xf32>
      %c2_124 = arith.constant 2 : index
      %c0_125 = arith.constant 0 : index
      %c0_126 = arith.constant 0 : index
      %212 = vector.load %arg10[%c2_124, %c0_125, %c0_126] : memref<4x32x8xbf16, #tpu.memory_space<vmem>>, vector<1x32x8xbf16>
      %213 = vector.shape_cast %212 : vector<1x32x8xbf16> to vector<32x8xbf16>
      %cst_127 = arith.constant dense<0.000000e+00> : vector<8x8xf32>
      %214 = tpu.matmul %160, %213, %cst_127 {dimension_numbers = #tpu.dot_dimension_numbers<[1], [0], [0], [1], [0, 0, 1, 1], [], []>} : vector<8x32xbf16>, vector<32x8xbf16>, vector<8x8xf32> -> vector<8x8xf32>
      %c2_128 = arith.constant 2 : index
      %c0_129 = arith.constant 0 : index
      %c0_130 = arith.constant 0 : index
      %215 = vector.load %arg11[%c2_128, %c0_129, %c0_130] : memref<4x1x8xf32, #tpu.memory_space<vmem>>, vector<1x1x8xf32>
      %216 = vector.shape_cast %215 : vector<1x1x8xf32> to vector<1x8xf32>
      %217 = vector.broadcast %216 : vector<1x8xf32> to vector<8x8xf32>
      %218 = arith.addf %214, %217 : vector<8x8xf32>
      %219 = arith.truncf %211 : vector<8x8xf32> to vector<8x8xbf16>
      %c2_131 = arith.constant 2 : index
      %c0_132 = arith.constant 0 : index
      %c0_133 = arith.constant 0 : index
      %220 = vector.load %arg15[%c2_131, %c0_132, %c0_133] : memref<4x8x8xbf16, #tpu.memory_space<vmem>>, vector<1x8x8xbf16>
      %221 = vector.shape_cast %220 : vector<1x8x8xbf16> to vector<8x8xbf16>
      %222 = vector.shape_cast %219 : vector<8x8xbf16> to vector<1x8x8xbf16>
      tpu.vector_store %arg15[%c2_131, %c0_132, %c0_133], %222 {strides = array<i32>} : memref<4x8x8xbf16, #tpu.memory_space<vmem>>, vector<1x8x8xbf16>,
      %223 = arith.truncf %218 : vector<8x8xf32> to vector<8x8xbf16>
      %c2_134 = arith.constant 2 : index
      %c0_135 = arith.constant 0 : index
      %c0_136 = arith.constant 0 : index
      %224 = vector.load %arg16[%c2_134, %c0_135, %c0_136] : memref<4x8x8xbf16, #tpu.memory_space<vmem>>, vector<1x8x8xbf16>
      %225 = vector.shape_cast %224 : vector<1x8x8xbf16> to vector<8x8xbf16>
      %226 = vector.shape_cast %223 : vector<8x8xbf16> to vector<1x8x8xbf16>
      tpu.vector_store %arg16[%c2_134, %c0_135, %c0_136], %226 {strides = array<i32>} : memref<4x8x8xbf16, #tpu.memory_space<vmem>>, vector<1x8x8xbf16>,
      %c3 = arith.constant 3 : index
      %c0_137 = arith.constant 0 : index
      %c0_138 = arith.constant 0 : index
      %227 = vector.load %arg8[%c3, %c0_137, %c0_138] : memref<4x32x8xbf16, #tpu.memory_space<vmem>>, vector<1x32x8xbf16>
      %228 = vector.shape_cast %227 : vector<1x32x8xbf16> to vector<32x8xbf16>
      %cst_139 = arith.constant dense<0.000000e+00> : vector<8x8xf32>
      %229 = tpu.matmul %158, %228, %cst_139 {dimension_numbers = #tpu.dot_dimension_numbers<[1], [0], [0], [1], [0, 0, 1, 1], [], []>} : vector<8x32xbf16>, vector<32x8xbf16>, vector<8x8xf32> -> vector<8x8xf32>
      %c3_140 = arith.constant 3 : index
      %c0_141 = arith.constant 0 : index
      %c0_142 = arith.constant 0 : index
      %230 = vector.load %arg9[%c3_140, %c0_141, %c0_142] : memref<4x1x8xf32, #tpu.memory_space<vmem>>, vector<1x1x8xf32>
      %231 = vector.shape_cast %230 : vector<1x1x8xf32> to vector<1x8xf32>
      %232 = vector.broadcast %231 : vector<1x8xf32> to vector<8x8xf32>
      %233 = arith.addf %229, %232 : vector<8x8xf32>
      %c3_143 = arith.constant 3 : index
      %c0_144 = arith.constant 0 : index
      %c0_145 = arith.constant 0 : index
      %234 = vector.load %arg10[%c3_143, %c0_144, %c0_145] : memref<4x32x8xbf16, #tpu.memory_space<vmem>>, vector<1x32x8xbf16>
      %235 = vector.shape_cast %234 : vector<1x32x8xbf16> to vector<32x8xbf16>
      %cst_146 = arith.constant dense<0.000000e+00> : vector<8x8xf32>
      %236 = tpu.matmul %160, %235, %cst_146 {dimension_numbers = #tpu.dot_dimension_numbers<[1], [0], [0], [1], [0, 0, 1, 1], [], []>} : vector<8x32xbf16>, vector<32x8xbf16>, vector<8x8xf32> -> vector<8x8xf32>
      %c3_147 = arith.constant 3 : index
      %c0_148 = arith.constant 0 : index
      %c0_149 = arith.constant 0 : index
      %237 = vector.load %arg11[%c3_147, %c0_148, %c0_149] : memref<4x1x8xf32, #tpu.memory_space<vmem>>, vector<1x1x8xf32>
      %238 = vector.shape_cast %237 : vector<1x1x8xf32> to vector<1x8xf32>
      %239 = vector.broadcast %238 : vector<1x8xf32> to vector<8x8xf32>
      %240 = arith.addf %236, %239 : vector<8x8xf32>
      %241 = arith.truncf %233 : vector<8x8xf32> to vector<8x8xbf16>
      %c3_150 = arith.constant 3 : index
      %c0_151 = arith.constant 0 : index
      %c0_152 = arith.constant 0 : index
      %242 = vector.load %arg15[%c3_150, %c0_151, %c0_152] : memref<4x8x8xbf16, #tpu.memory_space<vmem>>, vector<1x8x8xbf16>
      %243 = vector.shape_cast %242 : vector<1x8x8xbf16> to vector<8x8xbf16>
      %244 = vector.shape_cast %241 : vector<8x8xbf16> to vector<1x8x8xbf16>
      tpu.vector_store %arg15[%c3_150, %c0_151, %c0_152], %244 {strides = array<i32>} : memref<4x8x8xbf16, #tpu.memory_space<vmem>>, vector<1x8x8xbf16>,
      %245 = arith.truncf %240 : vector<8x8xf32> to vector<8x8xbf16>
      %c3_153 = arith.constant 3 : index
      %c0_154 = arith.constant 0 : index
      %c0_155 = arith.constant 0 : index
      %246 = vector.load %arg16[%c3_153, %c0_154, %c0_155] : memref<4x8x8xbf16, #tpu.memory_space<vmem>>, vector<1x8x8xbf16>
      %247 = vector.shape_cast %246 : vector<1x8x8xbf16> to vector<8x8xbf16>
      %248 = vector.shape_cast %245 : vector<8x8xbf16> to vector<1x8x8xbf16>
      tpu.vector_store %arg16[%c3_153, %c0_154, %c0_155], %248 {strides = array<i32>} : memref<4x8x8xbf16, #tpu.memory_space<vmem>>, vector<1x8x8xbf16>,
    } else {
    }
    %c0 = arith.constant 0 : index
    %c0_2 = arith.constant 0 : index
    %c0_3 = arith.constant 0 : index
    %5 = vector.load %arg3[%c0, %c0_2, %c0_3] : memref<1x8x32xbf16, #tpu.memory_space<vmem>>, vector<1x8x32xbf16>
    %6 = vector.shape_cast %5 : vector<1x8x32xbf16> to vector<8x32xbf16>
    %c4_i32 = arith.constant 4 : i32
    %7 = arith.muli %arg2, %c4_i32 : i32
    %c0_i32_4 = arith.constant 0 : i32
    %8 = arith.addi %7, %c0_i32_4 : i32
    %9 = arith.index_cast %8 : i32 to index
    %c0_5 = arith.constant 0 : index
    %c0_6 = arith.constant 0 : index
    %10 = vector.load %arg6[%9, %c0_5, %c0_6] : memref<4x32x8xbf16, #tpu.memory_space<vmem>>, vector<1x32x8xbf16>
    %11 = vector.shape_cast %10 : vector<1x32x8xbf16> to vector<32x8xbf16>
    %cst = arith.constant dense<0.000000e+00> : vector<8x8xf32>
    %12 = tpu.matmul %6, %11, %cst {dimension_numbers = #tpu.dot_dimension_numbers<[1], [0], [0], [1], [0, 0, 1, 1], [], []>} : vector<8x32xbf16>, vector<32x8xbf16>, vector<8x8xf32> -> vector<8x8xf32>
    %13 = arith.index_cast %8 : i32 to index
    %c0_7 = arith.constant 0 : index
    %c0_8 = arith.constant 0 : index
    %14 = vector.load %arg7[%13, %c0_7, %c0_8] : memref<4x1x8xf32, #tpu.memory_space<vmem>>, vector<1x1x8xf32>
    %15 = vector.shape_cast %14 : vector<1x1x8xf32> to vector<1x8xf32>
    %16 = vector.broadcast %15 : vector<1x8xf32> to vector<8x8xf32>
    %17 = arith.addf %12, %16 : vector<8x8xf32>
    %18 = arith.index_cast %8 : i32 to index
    %c0_9 = arith.constant 0 : index
    %c0_10 = arith.constant 0 : index
    %19 = vector.load %arg15[%18, %c0_9, %c0_10] : memref<4x8x8xbf16, #tpu.memory_space<vmem>>, vector<1x8x8xbf16>
    %20 = vector.shape_cast %19 : vector<1x8x8xbf16> to vector<8x8xbf16>
    %21 = arith.index_cast %8 : i32 to index
    %c0_11 = arith.constant 0 : index
    %c0_12 = arith.constant 0 : index
    %22 = vector.load %arg16[%21, %c0_11, %c0_12] : memref<4x8x8xbf16, #tpu.memory_space<vmem>>, vector<1x8x8xbf16>
    %23 = vector.shape_cast %22 : vector<1x8x8xbf16> to vector<8x8xbf16>
    %24 = arith.truncf %17 : vector<8x8xf32> to vector<8x8xbf16>
    "tpu.trace_start"() <{level = 10 : i32, message = "qd,kd->qk"}> : () -> ()
    %cst_13 = arith.constant dense<0.000000e+00> : vector<8x8xf32>
    %25 = tpu.matmul %24, %20, %cst_13 {dimension_numbers = #tpu.dot_dimension_numbers<[1], [1], [0], [0], [0, 0, 1, 0], [], []>} : vector<8x8xbf16>, vector<8x8xbf16>, vector<8x8xf32> -> vector<8x8xf32>
    "tpu.trace_stop"() : () -> ()
    %cst_14 = arith.constant dense<0xFF800000> : vector<8xf32>
    %26 = vector.multi_reduction <maximumf>, %25, %cst_14 [1] : vector<8x8xf32> to vector<8xf32>
    %27 = vector.shape_cast %26 : vector<8xf32> to vector<8x1xf32>
    %28 = vector.broadcast %27 : vector<8x1xf32> to vector<8x8xf32>
    %29 = arith.subf %25, %28 : vector<8x8xf32>
    %30 = math.exp %29 : vector<8x8xf32>
    %cst_15 = arith.constant dense<0.000000e+00> : vector<8xf32>
    %31 = vector.multi_reduction <add>, %30, %cst_15 [1] : vector<8x8xf32> to vector<8xf32>
    %32 = vector.shape_cast %31 : vector<8xf32> to vector<8x1xf32>
    %33 = arith.truncf %30 : vector<8x8xf32> to vector<8x8xbf16>
    %cst_16 = arith.constant dense<0.000000e+00> : vector<8x8xf32>
    %34 = tpu.matmul %33, %23, %cst_16 {dimension_numbers = #tpu.dot_dimension_numbers<[1], [0], [0], [1], [0, 0, 1, 1], [], []>} : vector<8x8xbf16>, vector<8x8xbf16>, vector<8x8xf32> -> vector<8x8xf32>
    %35 = tpu.reciprocal %32 {approx = true} : vector<8x1xf32> -> vector<8x1xf32>
    %36 = vector.broadcast %35 : vector<8x1xf32> to vector<8x8xf32>
    %37 = arith.mulf %34, %36 : vector<8x8xf32>
    %38 = arith.truncf %37 : vector<8x8xf32> to vector<8x8xbf16>
    %39 = arith.index_cast %8 : i32 to index
    %c0_17 = arith.constant 0 : index
    %c0_18 = arith.constant 0 : index
    %40 = vector.load %arg12[%39, %c0_17, %c0_18] : memref<4x8x128xbf16, #tpu.memory_space<vmem>>, vector<1x8x128xbf16>
    %41 = vector.shape_cast %40 : vector<1x8x128xbf16> to vector<8x128xbf16>
    %cst_19 = arith.constant dense<0.000000e+00> : vector<8x128xf32>
    %42 = tpu.matmul %38, %41, %cst_19 {dimension_numbers = #tpu.dot_dimension_numbers<[1], [0], [0], [1], [0, 0, 1, 1], [], []>} : vector<8x8xbf16>, vector<8x128xbf16>, vector<8x128xf32> -> vector<8x128xf32>
    %c1_i32 = arith.constant 1 : i32
    %43 = arith.addi %7, %c1_i32 : i32
    %44 = arith.index_cast %43 : i32 to index
    %c0_20 = arith.constant 0 : index
    %c0_21 = arith.constant 0 : index
    %45 = vector.load %arg6[%44, %c0_20, %c0_21] : memref<4x32x8xbf16, #tpu.memory_space<vmem>>, vector<1x32x8xbf16>
    %46 = vector.shape_cast %45 : vector<1x32x8xbf16> to vector<32x8xbf16>
    %cst_22 = arith.constant dense<0.000000e+00> : vector<8x8xf32>
    %47 = tpu.matmul %6, %46, %cst_22 {dimension_numbers = #tpu.dot_dimension_numbers<[1], [0], [0], [1], [0, 0, 1, 1], [], []>} : vector<8x32xbf16>, vector<32x8xbf16>, vector<8x8xf32> -> vector<8x8xf32>
    %48 = arith.index_cast %43 : i32 to index
    %c0_23 = arith.constant 0 : index
    %c0_24 = arith.constant 0 : index
    %49 = vector.load %arg7[%48, %c0_23, %c0_24] : memref<4x1x8xf32, #tpu.memory_space<vmem>>, vector<1x1x8xf32>
    %50 = vector.shape_cast %49 : vector<1x1x8xf32> to vector<1x8xf32>
    %51 = vector.broadcast %50 : vector<1x8xf32> to vector<8x8xf32>
    %52 = arith.addf %47, %51 : vector<8x8xf32>
    %53 = arith.index_cast %43 : i32 to index
    %c0_25 = arith.constant 0 : index
    %c0_26 = arith.constant 0 : index
    %54 = vector.load %arg15[%53, %c0_25, %c0_26] : memref<4x8x8xbf16, #tpu.memory_space<vmem>>, vector<1x8x8xbf16>
    %55 = vector.shape_cast %54 : vector<1x8x8xbf16> to vector<8x8xbf16>
    %56 = arith.index_cast %43 : i32 to index
    %c0_27 = arith.constant 0 : index
    %c0_28 = arith.constant 0 : index
    %57 = vector.load %arg16[%56, %c0_27, %c0_28] : memref<4x8x8xbf16, #tpu.memory_space<vmem>>, vector<1x8x8xbf16>
    %58 = vector.shape_cast %57 : vector<1x8x8xbf16> to vector<8x8xbf16>
    %59 = arith.truncf %52 : vector<8x8xf32> to vector<8x8xbf16>
    "tpu.trace_start"() <{level = 10 : i32, message = "qd,kd->qk"}> : () -> ()
    %cst_29 = arith.constant dense<0.000000e+00> : vector<8x8xf32>
    %60 = tpu.matmul %59, %55, %cst_29 {dimension_numbers = #tpu.dot_dimension_numbers<[1], [1], [0], [0], [0, 0, 1, 0], [], []>} : vector<8x8xbf16>, vector<8x8xbf16>, vector<8x8xf32> -> vector<8x8xf32>
    "tpu.trace_stop"() : () -> ()
    %cst_30 = arith.constant dense<0xFF800000> : vector<8xf32>
    %61 = vector.multi_reduction <maximumf>, %60, %cst_30 [1] : vector<8x8xf32> to vector<8xf32>
    %62 = vector.shape_cast %61 : vector<8xf32> to vector<8x1xf32>
    %63 = vector.broadcast %62 : vector<8x1xf32> to vector<8x8xf32>
    %64 = arith.subf %60, %63 : vector<8x8xf32>
    %65 = math.exp %64 : vector<8x8xf32>
    %cst_31 = arith.constant dense<0.000000e+00> : vector<8xf32>
    %66 = vector.multi_reduction <add>, %65, %cst_31 [1] : vector<8x8xf32> to vector<8xf32>
    %67 = vector.shape_cast %66 : vector<8xf32> to vector<8x1xf32>
    %68 = arith.truncf %65 : vector<8x8xf32> to vector<8x8xbf16>
    %cst_32 = arith.constant dense<0.000000e+00> : vector<8x8xf32>
    %69 = tpu.matmul %68, %58, %cst_32 {dimension_numbers = #tpu.dot_dimension_numbers<[1], [0], [0], [1], [0, 0, 1, 1], [], []>} : vector<8x8xbf16>, vector<8x8xbf16>, vector<8x8xf32> -> vector<8x8xf32>
    %70 = tpu.reciprocal %67 {approx = true} : vector<8x1xf32> -> vector<8x1xf32>
    %71 = vector.broadcast %70 : vector<8x1xf32> to vector<8x8xf32>
    %72 = arith.mulf %69, %71 : vector<8x8xf32>
    %73 = arith.truncf %72 : vector<8x8xf32> to vector<8x8xbf16>
    %74 = arith.index_cast %43 : i32 to index
    %c0_33 = arith.constant 0 : index
    %c0_34 = arith.constant 0 : index
    %75 = vector.load %arg12[%74, %c0_33, %c0_34] : memref<4x8x128xbf16, #tpu.memory_space<vmem>>, vector<1x8x128xbf16>
    %76 = vector.shape_cast %75 : vector<1x8x128xbf16> to vector<8x128xbf16>
    %cst_35 = arith.constant dense<0.000000e+00> : vector<8x128xf32>
    %77 = tpu.matmul %73, %76, %cst_35 {dimension_numbers = #tpu.dot_dimension_numbers<[1], [0], [0], [1], [0, 0, 1, 1], [], []>} : vector<8x8xbf16>, vector<8x128xbf16>, vector<8x128xf32> -> vector<8x128xf32>
    %78 = arith.addf %42, %77 : vector<8x128xf32>
    %c2_i32 = arith.constant 2 : i32
    %79 = arith.addi %7, %c2_i32 : i32
    %80 = arith.index_cast %79 : i32 to index
    %c0_36 = arith.constant 0 : index
    %c0_37 = arith.constant 0 : index
    %81 = vector.load %arg6[%80, %c0_36, %c0_37] : memref<4x32x8xbf16, #tpu.memory_space<vmem>>, vector<1x32x8xbf16>
    %82 = vector.shape_cast %81 : vector<1x32x8xbf16> to vector<32x8xbf16>
    %cst_38 = arith.constant dense<0.000000e+00> : vector<8x8xf32>
    %83 = tpu.matmul %6, %82, %cst_38 {dimension_numbers = #tpu.dot_dimension_numbers<[1], [0], [0], [1], [0, 0, 1, 1], [], []>} : vector<8x32xbf16>, vector<32x8xbf16>, vector<8x8xf32> -> vector<8x8xf32>
    %84 = arith.index_cast %79 : i32 to index
    %c0_39 = arith.constant 0 : index
    %c0_40 = arith.constant 0 : index
    %85 = vector.load %arg7[%84, %c0_39, %c0_40] : memref<4x1x8xf32, #tpu.memory_space<vmem>>, vector<1x1x8xf32>
    %86 = vector.shape_cast %85 : vector<1x1x8xf32> to vector<1x8xf32>
    %87 = vector.broadcast %86 : vector<1x8xf32> to vector<8x8xf32>
    %88 = arith.addf %83, %87 : vector<8x8xf32>
    %89 = arith.index_cast %79 : i32 to index
    %c0_41 = arith.constant 0 : index
    %c0_42 = arith.constant 0 : index
    %90 = vector.load %arg15[%89, %c0_41, %c0_42] : memref<4x8x8xbf16, #tpu.memory_space<vmem>>, vector<1x8x8xbf16>
    %91 = vector.shape_cast %90 : vector<1x8x8xbf16> to vector<8x8xbf16>
    %92 = arith.index_cast %79 : i32 to index
    %c0_43 = arith.constant 0 : index
    %c0_44 = arith.constant 0 : index
    %93 = vector.load %arg16[%92, %c0_43, %c0_44] : memref<4x8x8xbf16, #tpu.memory_space<vmem>>, vector<1x8x8xbf16>
    %94 = vector.shape_cast %93 : vector<1x8x8xbf16> to vector<8x8xbf16>
    %95 = arith.truncf %88 : vector<8x8xf32> to vector<8x8xbf16>
    "tpu.trace_start"() <{level = 10 : i32, message = "qd,kd->qk"}> : () -> ()
    %cst_45 = arith.constant dense<0.000000e+00> : vector<8x8xf32>
    %96 = tpu.matmul %95, %91, %cst_45 {dimension_numbers = #tpu.dot_dimension_numbers<[1], [1], [0], [0], [0, 0, 1, 0], [], []>} : vector<8x8xbf16>, vector<8x8xbf16>, vector<8x8xf32> -> vector<8x8xf32>
    "tpu.trace_stop"() : () -> ()
    %cst_46 = arith.constant dense<0xFF800000> : vector<8xf32>
    %97 = vector.multi_reduction <maximumf>, %96, %cst_46 [1] : vector<8x8xf32> to vector<8xf32>
    %98 = vector.shape_cast %97 : vector<8xf32> to vector<8x1xf32>
    %99 = vector.broadcast %98 : vector<8x1xf32> to vector<8x8xf32>
    %100 = arith.subf %96, %99 : vector<8x8xf32>
    %101 = math.exp %100 : vector<8x8xf32>
    %cst_47 = arith.constant dense<0.000000e+00> : vector<8xf32>
    %102 = vector.multi_reduction <add>, %101, %cst_47 [1] : vector<8x8xf32> to vector<8xf32>
    %103 = vector.shape_cast %102 : vector<8xf32> to vector<8x1xf32>
    %104 = arith.truncf %101 : vector<8x8xf32> to vector<8x8xbf16>
    %cst_48 = arith.constant dense<0.000000e+00> : vector<8x8xf32>
    %105 = tpu.matmul %104, %94, %cst_48 {dimension_numbers = #tpu.dot_dimension_numbers<[1], [0], [0], [1], [0, 0, 1, 1], [], []>} : vector<8x8xbf16>, vector<8x8xbf16>, vector<8x8xf32> -> vector<8x8xf32>
    %106 = tpu.reciprocal %103 {approx = true} : vector<8x1xf32> -> vector<8x1xf32>
    %107 = vector.broadcast %106 : vector<8x1xf32> to vector<8x8xf32>
    %108 = arith.mulf %105, %107 : vector<8x8xf32>
    %109 = arith.truncf %108 : vector<8x8xf32> to vector<8x8xbf16>
    %110 = arith.index_cast %79 : i32 to index
    %c0_49 = arith.constant 0 : index
    %c0_50 = arith.constant 0 : index
    %111 = vector.load %arg12[%110, %c0_49, %c0_50] : memref<4x8x128xbf16, #tpu.memory_space<vmem>>, vector<1x8x128xbf16>
    %112 = vector.shape_cast %111 : vector<1x8x128xbf16> to vector<8x128xbf16>
    %cst_51 = arith.constant dense<0.000000e+00> : vector<8x128xf32>
    %113 = tpu.matmul %109, %112, %cst_51 {dimension_numbers = #tpu.dot_dimension_numbers<[1], [0], [0], [1], [0, 0, 1, 1], [], []>} : vector<8x8xbf16>, vector<8x128xbf16>, vector<8x128xf32> -> vector<8x128xf32>
    %114 = arith.addf %78, %113 : vector<8x128xf32>
    %c3_i32 = arith.constant 3 : i32
    %115 = arith.addi %7, %c3_i32 : i32
    %116 = arith.index_cast %115 : i32 to index
    %c0_52 = arith.constant 0 : index
    %c0_53 = arith.constant 0 : index
    %117 = vector.load %arg6[%116, %c0_52, %c0_53] : memref<4x32x8xbf16, #tpu.memory_space<vmem>>, vector<1x32x8xbf16>
    %118 = vector.shape_cast %117 : vector<1x32x8xbf16> to vector<32x8xbf16>
    %cst_54 = arith.constant dense<0.000000e+00> : vector<8x8xf32>
    %119 = tpu.matmul %6, %118, %cst_54 {dimension_numbers = #tpu.dot_dimension_numbers<[1], [0], [0], [1], [0, 0, 1, 1], [], []>} : vector<8x32xbf16>, vector<32x8xbf16>, vector<8x8xf32> -> vector<8x8xf32>
    %120 = arith.index_cast %115 : i32 to index
    %c0_55 = arith.constant 0 : index
    %c0_56 = arith.constant 0 : index
    %121 = vector.load %arg7[%120, %c0_55, %c0_56] : memref<4x1x8xf32, #tpu.memory_space<vmem>>, vector<1x1x8xf32>
    %122 = vector.shape_cast %121 : vector<1x1x8xf32> to vector<1x8xf32>
    %123 = vector.broadcast %122 : vector<1x8xf32> to vector<8x8xf32>
    %124 = arith.addf %119, %123 : vector<8x8xf32>
    %125 = arith.index_cast %115 : i32 to index
    %c0_57 = arith.constant 0 : index
    %c0_58 = arith.constant 0 : index
    %126 = vector.load %arg15[%125, %c0_57, %c0_58] : memref<4x8x8xbf16, #tpu.memory_space<vmem>>, vector<1x8x8xbf16>
    %127 = vector.shape_cast %126 : vector<1x8x8xbf16> to vector<8x8xbf16>
    %128 = arith.index_cast %115 : i32 to index
    %c0_59 = arith.constant 0 : index
    %c0_60 = arith.constant 0 : index
    %129 = vector.load %arg16[%128, %c0_59, %c0_60] : memref<4x8x8xbf16, #tpu.memory_space<vmem>>, vector<1x8x8xbf16>
    %130 = vector.shape_cast %129 : vector<1x8x8xbf16> to vector<8x8xbf16>
    %131 = arith.truncf %124 : vector<8x8xf32> to vector<8x8xbf16>
    "tpu.trace_start"() <{level = 10 : i32, message = "qd,kd->qk"}> : () -> ()
    %cst_61 = arith.constant dense<0.000000e+00> : vector<8x8xf32>
    %132 = tpu.matmul %131, %127, %cst_61 {dimension_numbers = #tpu.dot_dimension_numbers<[1], [1], [0], [0], [0, 0, 1, 0], [], []>} : vector<8x8xbf16>, vector<8x8xbf16>, vector<8x8xf32> -> vector<8x8xf32>
    "tpu.trace_stop"() : () -> ()
    %cst_62 = arith.constant dense<0xFF800000> : vector<8xf32>
    %133 = vector.multi_reduction <maximumf>, %132, %cst_62 [1] : vector<8x8xf32> to vector<8xf32>
    %134 = vector.shape_cast %133 : vector<8xf32> to vector<8x1xf32>
    %135 = vector.broadcast %134 : vector<8x1xf32> to vector<8x8xf32>
    %136 = arith.subf %132, %135 : vector<8x8xf32>
    %137 = math.exp %136 : vector<8x8xf32>
    %cst_63 = arith.constant dense<0.000000e+00> : vector<8xf32>
    %138 = vector.multi_reduction <add>, %137, %cst_63 [1] : vector<8x8xf32> to vector<8xf32>
    %139 = vector.shape_cast %138 : vector<8xf32> to vector<8x1xf32>
    %140 = arith.truncf %137 : vector<8x8xf32> to vector<8x8xbf16>
    %cst_64 = arith.constant dense<0.000000e+00> : vector<8x8xf32>
    %141 = tpu.matmul %140, %130, %cst_64 {dimension_numbers = #tpu.dot_dimension_numbers<[1], [0], [0], [1], [0, 0, 1, 1], [], []>} : vector<8x8xbf16>, vector<8x8xbf16>, vector<8x8xf32> -> vector<8x8xf32>
    %142 = tpu.reciprocal %139 {approx = true} : vector<8x1xf32> -> vector<8x1xf32>
    %143 = vector.broadcast %142 : vector<8x1xf32> to vector<8x8xf32>
    %144 = arith.mulf %141, %143 : vector<8x8xf32>
    %145 = arith.truncf %144 : vector<8x8xf32> to vector<8x8xbf16>
    %146 = arith.index_cast %115 : i32 to index
    %c0_65 = arith.constant 0 : index
    %c0_66 = arith.constant 0 : index
    %147 = vector.load %arg12[%146, %c0_65, %c0_66] : memref<4x8x128xbf16, #tpu.memory_space<vmem>>, vector<1x8x128xbf16>
    %148 = vector.shape_cast %147 : vector<1x8x128xbf16> to vector<8x128xbf16>
    %cst_67 = arith.constant dense<0.000000e+00> : vector<8x128xf32>
    %149 = tpu.matmul %145, %148, %cst_67 {dimension_numbers = #tpu.dot_dimension_numbers<[1], [0], [0], [1], [0, 0, 1, 1], [], []>} : vector<8x8xbf16>, vector<8x128xbf16>, vector<8x128xf32> -> vector<8x128xf32>
    %150 = arith.addf %114, %149 : vector<8x128xf32>
    %c0_68 = arith.constant 0 : index
    %c0_69 = arith.constant 0 : index
    %151 = vector.load %arg13[%c0_68, %c0_69] : memref<1x128xf32, #tpu.memory_space<vmem>>, vector<1x128xf32>
    %152 = vector.broadcast %151 : vector<1x128xf32> to vector<8x128xf32>
    %153 = arith.addf %150, %152 : vector<8x128xf32>
    %c0_70 = arith.constant 0 : index
    %c0_71 = arith.constant 0 : index
    %c0_72 = arith.constant 0 : index
    %154 = vector.load %arg14[%c0_70, %c0_71, %c0_72] : memref<1x8x128xf32, #tpu.memory_space<vmem>>, vector<1x8x128xf32>
    %155 = vector.shape_cast %154 : vector<1x8x128xf32> to vector<8x128xf32>
    %156 = vector.shape_cast %153 : vector<8x128xf32> to vector<1x8x128xf32>
    tpu.vector_store %arg14[%c0_70, %c0_71, %c0_72], %156 {strides = array<i32>} : memref<1x8x128xf32, #tpu.memory_space<vmem>>, vector<1x8x128xf32>,
    return
  }
  func.func @transform_0(%arg0: i32, %arg1: i32, %arg2: i32) -> (i32, i32, i32) {
    %c0_i32 = arith.constant 0 : i32
    %c0_i32_0 = arith.constant 0 : i32
    return %arg0, %arg1, %c0_i32 : i32, i32, i32
  }
  func.func @transform_1(%arg0: i32, %arg1: i32, %arg2: i32) -> (i32, i32, i32) {
    %c0_i32 = arith.constant 0 : i32
    %c0_i32_0 = arith.constant 0 : i32
    %c0_i32_1 = arith.constant 0 : i32
    return %arg0, %c0_i32, %c0_i32_0 : i32, i32, i32
  }
  func.func @transform_2(%arg0: i32, %arg1: i32, %arg2: i32) -> (i32, i32, i32) {
    %c0_i32 = arith.constant 0 : i32
    %c0_i32_0 = arith.constant 0 : i32
    %c0_i32_1 = arith.constant 0 : i32
    return %arg0, %c0_i32, %c0_i32_0 : i32, i32, i32
  }
  func.func @transform_3(%arg0: i32, %arg1: i32, %arg2: i32) -> (i32, i32, i32) {
    %c0_i32 = arith.constant 0 : i32
    %c0_i32_0 = arith.constant 0 : i32
    %c0_i32_1 = arith.constant 0 : i32
    %c0_i32_2 = arith.constant 0 : i32
    return %c0_i32, %c0_i32_0, %c0_i32_1 : i32, i32, i32
  }
  func.func @transform_4(%arg0: i32, %arg1: i32, %arg2: i32) -> (i32, i32, i32) {
    %c0_i32 = arith.constant 0 : i32
    %c0_i32_0 = arith.constant 0 : i32
    %c0_i32_1 = arith.constant 0 : i32
    %c0_i32_2 = arith.constant 0 : i32
    return %c0_i32, %c0_i32_0, %c0_i32_1 : i32, i32, i32
  }
  func.func @transform_5(%arg0: i32, %arg1: i32, %arg2: i32) -> (i32, i32, i32) {
    %c0_i32 = arith.constant 0 : i32
    %c0_i32_0 = arith.constant 0 : i32
    %c0_i32_1 = arith.constant 0 : i32
    %c0_i32_2 = arith.constant 0 : i32
    return %c0_i32, %c0_i32_0, %c0_i32_1 : i32, i32, i32
  }
  func.func @transform_6(%arg0: i32, %arg1: i32, %arg2: i32) -> (i32, i32, i32) {
    %c0_i32 = arith.constant 0 : i32
    %c0_i32_0 = arith.constant 0 : i32
    %c0_i32_1 = arith.constant 0 : i32
    %c0_i32_2 = arith.constant 0 : i32
    return %c0_i32, %c0_i32_0, %c0_i32_1 : i32, i32, i32
  }
  func.func @transform_7(%arg0: i32, %arg1: i32, %arg2: i32) -> (i32, i32, i32) {
    %c0_i32 = arith.constant 0 : i32
    %c0_i32_0 = arith.constant 0 : i32
    %c0_i32_1 = arith.constant 0 : i32
    %c0_i32_2 = arith.constant 0 : i32
    return %c0_i32, %c0_i32_0, %c0_i32_1 : i32, i32, i32
  }
  func.func @transform_8(%arg0: i32, %arg1: i32, %arg2: i32) -> (i32, i32, i32) {
    %c0_i32 = arith.constant 0 : i32
    %c0_i32_0 = arith.constant 0 : i32
    %c0_i32_1 = arith.constant 0 : i32
    %c0_i32_2 = arith.constant 0 : i32
    return %c0_i32, %c0_i32_0, %c0_i32_1 : i32, i32, i32
  }
  func.func @transform_9(%arg0: i32, %arg1: i32, %arg2: i32) -> (i32, i32, i32) {
    %c0_i32 = arith.constant 0 : i32
    %c0_i32_0 = arith.constant 0 : i32
    %c0_i32_1 = arith.constant 0 : i32
    %c0_i32_2 = arith.constant 0 : i32
    return %c0_i32, %c0_i32_0, %c0_i32_1 : i32, i32, i32
  }
  func.func @transform_10(%arg0: i32, %arg1: i32, %arg2: i32) -> (i32, i32) {
    %c0_i32 = arith.constant 0 : i32
    %c0_i32_0 = arith.constant 0 : i32
    %c0_i32_1 = arith.constant 0 : i32
    return %c0_i32, %c0_i32_0 : i32, i32
  }
  func.func @transform_11(%arg0: i32, %arg1: i32, %arg2: i32) -> (i32, i32, i32) {
    %c0_i32 = arith.constant 0 : i32
    %c0_i32_0 = arith.constant 0 : i32
    return %arg0, %arg1, %c0_i32 : i32, i32, i32
  }
}

</mosaic_0001>

<bundles_post_ra>
// kernel: tpu_custom_call.1
= control target key start
LH: loop header
LB: loop body
LE: loop exit
PB: predicated region body
PF: predicated region fallthrough
CT: control target
= control target key end

     0   :  { %s3101_s0 = inlined_call_operand.vmem [shape: bf16[2,8,32], index: 0, kind: input, shape index: {}]   ;;  %s3102_s1 = inlined_call_operand.vmem [shape: bf16[2,8,32], index: 1, kind: input, shape index: {}]   ;;  %s3103_s2 = inlined_call_operand.vmem [shape: bf16[2,8,32], index: 2, kind: input, shape index: {}]   ;;  %s3104_s3 = inlined_call_operand.vmem [shape: bf16[4,32,8], index: 3, kind: input, shape index: {}]   ;;  %s3105_s4 = inlined_call_operand.vmem [shape: f32[4,1,8], index: 4, kind: input, shape index: {}]   ;;  %s3106_s5 = inlined_call_operand.vmem [shape: bf16[4,32,8], index: 5, kind: input, shape index: {}]   ;;  %s3107_s6 = inlined_call_operand.vmem [shape: f32[4,1,8], index: 6, kind: input, shape index: {}]   ;;  %s3108_s7 = inlined_call_operand.vmem [shape: bf16[4,32,8], index: 7, kind: input, shape index: {}]   ;;  %s3109_s8 = inlined_call_operand.vmem [shape: f32[4,1,8], index: 8, kind: input, shape index: {}]   ;;  %s3110_s9 = inlined_call_operand.vmem [shape: bf16[4,8,128], index: 9, kind: input, shape index: {}]   ;;  %s3111_s10 = inlined_call_operand.vmem [shape: f32[1,128], index: 10, kind: input, shape index: {}]   ;;  %s3112_s11 = inlined_call_operand.hbm [shape: f32[2,8,128], index: 11, kind: output, shape index: {}]  }
   0x1   :  { %3113 = sst [smem:[#allocation8_spill]] %s3101_s0 }
   0x2   :  { %3114 = sst [smem:[#allocation9_spill]] %s3102_s1 }
   0x3   :  { %16 = vsyncpa [#allocation6], 0 }
   0x4   :  { %18 = vsyncpa [#allocation6 + $0x1], 0  ;;  %s2711_s17 = smov 0   ;;  %s2713_s18 = smov 0  }
   0x5   :  { %s2715_s19 = smov 0   ;;  %s2717_s20 = smov 0  }
   0x6   :  { %s2719_s21 = smov 0   ;;  %s2721_s22 = smov 0  }
   0x7 LB: > { %s2117_s23 = sadd.s32 4294967295, %s2646_s22   ;;  %s2118_s24 = sadd.s32 4294967294, %s2646_s22   ;;  %s2646_s22 = sphi %s2721_s22, %s24_s22   ;;  %s2642_s21 = sphi %s2719_s21, %s3123_s21   ;;  %s2638_s20 = sphi %s2717_s20, %s3122_s20   ;;  %s2634_s19 = sphi %s2715_s19, %s3121_s19   ;;  %s2630_s18 = sphi %s2713_s18, %s3120_s18   ;;  %s2626_s17 = sphi %s2711_s17, %s3119_s17  }
   0x8   : > { %s43_s25 = sadd.s32 1, %s2642_s21  ;;  %s300_s26 = sadd.s32 1, %s2634_s19 }
   0x9   : > { %p45_p0 = scmp.ge.s32.totalorder %s43_s25, 2  ;;  %p310_p1 = scmp.ne.s32.totalorder %s2634_s19, %s2630_s18 }
   0xa   : > { %p311_p2 = scmp.eq.s32.totalorder %s2117_s23, 1  ;;  %p316_p3 = scmp.ne.s32.totalorder %s2630_s18, %s2626_s17 }
   0xb   : > { %s3125_s25 = smov (%p45_p0, %s43_s25), 0  ;;  %p317_p5 = scmp.eq.s32.totalorder %s2118_s24, 1 }
   0xc   : > { %p2751_p4 = por %p311_p2, %p310_p1  ;;  %s295_s28 = ssub.s32 %s2642_s21, %s3125_s25 }
   0xd   : > { %p2121_p6 = scmp.ge.s32.totalorder %s2646_s22, 1  ;;  %p298_p7 = scmp.eq.s32.totalorder %s295_s28, 0 }
   0xe   : > { %p2758_p8 = por %p317_p5, %p316_p3  ;;  %p383_p9 = scmp.lt.s32.totalorder %s2646_s22, 3 }
   0xf   : > { %s2764_s30 = scalar_select %p298_p7, %s2634_s19, %s300_s26  }
  0x10   : > { %p384_p10 = pnand %p2121_p6, %p383_p9 }
  0x11   : > { %p433_p11 = scmp.lt.s32.totalorder (!%p384_p10), %s2638_s20, 1  ;;  %s3117_s1 = sld [smem:[#allocation9_spill]] (!%p384_p10) }
  0x12   : > { %387 = sbr.rel (%p384_p10) target bundleno = 2692 (0xa84), region = 64  ;;  %s3118_s0 = sld [smem:[#allocation8_spill]] (!%p384_p10) }
  0x13   : > { %s430_s24 = sand.u32 (!%p384_p10), 1, %s2630_s18   ;;  %s2242_s12 = sshll.u32 (!%p384_p10), %s2638_s20, 7 }
  0x14   : > { %s2122_s26 = sshll.u32 (!%p384_p10), %s430_s24, 3  ;;  %s1938_s28 = scalar_lea.sflag (!%p384_p10), [#allocation6], %s430_s24 }
  0x17   : > { %v2530_v0 = vld [vmem:[%s3106_s5 + $0x8] sm:$0xff]   ;;  %v2648_v1 = vmov 0.0   ;;  %v2531_v2 = vld [vmem:[%s3106_s5] sm:$0xff]   ;;  %vm2649_vm0 = vmmov 0   ;;  %s434_s16 = scalar_select %p433_p11, %s2638_s20, 1  ;;  %vm480_vm1 = vcmask 261120  }
  0x18   : > { %2305 = vmatprep.subr.bf16.mxu0 %v2648_v1  ;;  %2313 = vmatprep.subr.bf16.mxu1 %v2648_v1  ;;  %v2532_v3 = vld [vmem:[%s3106_s5 + $0x18] sm:$0xff]   ;;  %v2533_v5 = vld [vmem:[%s3106_s5 + $0x10] sm:$0xff]   ;;  %v2540_v6 = vld [vmem:[%s3108_s7 + $0x8] sm:$0xff]   ;;  %vm591_vm2 = vcmask 60416   ;;  %vm1083_vm3 = vcmask 64512   ;;  %vm1143_vm4 = vcmask 1043456  }
  0x19   : > { %2306 = vmatpush3.bf16.msra.mxu0 %v2530_v0  ;;  %2309 = vmatprep.mubr.msk.bf16.mxu0 %vm2649_vm0, %v2648_v1  ;;  %s2781_s23 = sshll.u32 %s434_s16, 2  ;;  %v2541_v7 = vld [vmem:[%s3108_s7] sm:$0xff]   ;;  %v2534_v8 = vld [vmem:[%s3106_s5 + $0x28] sm:$0xff]   ;;  %v2542_v11 = vld [vmem:[%s3108_s7 + $0x18] sm:$0xff]  }
  0x1a   : > { %2307 = vmatprep.subr.bf16.mxu0 %v2648_v1  ;;  %2317 = vmatprep.mubr.msk.bf16.mxu1 %vm2649_vm0, %v2648_v1  ;;  %s443_s13 = scalar_lea.vmem %s3117_s1, %s2781_s23  ;;  %s447_s1 = scalar_lea.vmem %s3103_s2, %s2781_s23  ;;  %v2535_v9 = vld [vmem:[%s3106_s5 + $0x20] sm:$0xff]   ;;  %v2543_v12 = vld [vmem:[%s3108_s7 + $0x10] sm:$0xff]   ;;  %v2536_v13 = vld [vmem:[%s3106_s5 + $0x38] sm:$0xff]  }
  0x1b   : > { %v455_v4 = vld [vmem:[%s443_s13] sm:$0xf]  ;;  %2314 = vmatpush3.bf16.msra.mxu1 %v2540_v6  ;;  %v2544_v14 = vld [vmem:[%s3108_s7 + $0x28] sm:$0xff]   ;;  %v2537_v15 = vld [vmem:[%s3106_s5 + $0x30] sm:$0xff]   ;;  %s439_s16 = scalar_lea.vmem %s3118_s0, %s2781_s23  ;;  %s432_s13 = scalar_lea.vmem [#allocation5], %s2122_s26 }
  0x1c   : > { %2315 = vmatprep.subr.bf16.mxu1 %v2648_v1  ;;  %v456_v10 = vld [vmem:[%s447_s1] sm:$0xf]  ;;  %v2538_v16 = vld [vmem:[%s3104_s3 + $0x8] sm:$0xff]   ;;  %v2546_v20 = vld [vmem:[%s3108_s7 + $0x38] sm:$0xff]   ;;  %s1952_s1 = sshll.u32 %s432_s13, 4  ;;  %s2650_s26 = smov [#allocation5]   ;;  %s3057_s1 = int_to_ptr.vmem [resolvable:$true] %s1952_s1 }
  0x1d   : > { %2308 = vmatpush3.bf16.msra.mxu0 %v2531_v2  ;;  %v2539_v17 = vld [vmem:[%s3104_s3] sm:$0xff]   ;;  %v2547_v21 = vld [vmem:[%s3108_s7 + $0x30] sm:$0xff]   ;;  %s2570_s20 = scalar_lea.vmem %s3057_s1, 128  ;;  %s2574_s23 = sshll.u32 %s2650_s26, 4  ;;  %s2575_s23 = int_to_ptr.vmem [resolvable:$false] %s2574_s23 }
  0x1e   : > { %2321 = vmatprep.subr.bf16.mxu0 %v2648_v1  ;;  %v2865_v18 = vld [vmem:[%s439_s16] sm:$0xf]  ;;  %s3055_s16 = scalar_lea.hbm %s3112_s11, %s2242_s12  ;;  %p2571_p12 = scmp.ne.s32.totalorder %s3057_s1, %s2570_s20 }
  0x1f   : > { %2316 = vmatpush3.bf16.msra.mxu1 %v2541_v7  ;;  %v2545_v19 = vld [vmem:[%s3108_s7 + $0x20] sm:$0xff]   ;;  %s2576_s14 = scalar_lea.vmem %s2575_s23, 256  ;;  %p2577_p1 = scmp.lt.s32.totalorder %s3057_s1, %s2575_s23 }
  0x20   : > { %2310 = vmatmul.mubr.msk.bf16.vlgmr.msra.gmra.mxu0 %vm480_vm1, %v455_v4  ;;  %2329 = vmatprep.subr.bf16.mxu1 %v2648_v1  ;;  %v2126_v22 = vld [vmem:[%s3107_s6] ss:$0 sm:$0xff]  ;;  %v2139_v29 = vld [vmem:[%s3107_s6 + $0x1] ss:$0 sm:$0xff]  ;;  %v2157_v42 = vld [vmem:[%s3107_s6 + $0x2] ss:$0 sm:$0xff]  ;;  %p2572_p13 = pnand %p2571_p12, %p2751_p4  ;;  %p2578_p2 = scmp.lt.s32.totalorder %s2576_s14, %s2570_s20 }
  0x21   : > { %2322 = vmatpush3.bf16.msra.mxu0 %v2532_v3  ;;  %2325 = vmatprep.mubr.msk.bf16.mxu0 %vm2649_vm0, %v2648_v1  ;;  %v2130_v32 = vld [vmem:[%s3109_s8] ss:$0 sm:$0xff]  ;;  %v2148_v48 = vld [vmem:[%s3109_s8 + $0x1] ss:$0 sm:$0xff]  ;;  %v2175_v56 = vld [vmem:[%s3107_s6 + $0x3] ss:$0 sm:$0xff] }
  0x22   : > { %2323 = vmatprep.subr.bf16.mxu0 %v2648_v1  ;;  %2318 = vmatmul.mubr.msk.bf16.vlgmr.msra.gmra.mxu1 %vm480_vm1, %v456_v10  ;;  %p2573_p0 = pneg %p2572_p13  ;;  %p2579_p3 = por %p2578_p2, %p2577_p1 }
  0x23   : > { %2330 = vmatpush3.bf16.msra.mxu1 %v2542_v11  ;;  %2333 = vmatprep.mubr.msk.bf16.mxu1 %vm2649_vm0, %v2648_v1 }
  0x24   : > { %2331 = vmatprep.subr.bf16.mxu1 %v2648_v1  ;;  %p2580_p5 = pnand %p2579_p3, %p2573_p0 }
  0x25   : > { %2324 = vmatpush3.bf16.msra.mxu0 %v2533_v5  ;;  %v2188_v5 = vld [vmem:[%s3105_s4] ss:$0 sm:$0xff] }
  0x26   : > { %2337 = vmatprep.subr.bf16.mxu0 %v2648_v1 }
  0x27   : > { %2332 = vmatpush3.bf16.msra.mxu1 %v2543_v12 }
  0x28   : > { %2326 = vmatmul.mubr.msk.bf16.vlgmr.msra.gmra.mxu0 %vm480_vm1, %v455_v4  ;;  %2345 = vmatprep.subr.bf16.mxu1 %v2648_v1 }
  0x29   : > { %2338 = vmatpush3.bf16.msra.mxu0 %v2534_v8  ;;  %2341 = vmatprep.mubr.msk.bf16.mxu0 %vm2649_vm0, %v2648_v1 }
  0x2a   : > { %2339 = vmatprep.subr.bf16.mxu0 %v2648_v1  ;;  %2334 = vmatmul.mubr.msk.bf16.vlgmr.msra.gmra.mxu1 %vm480_vm1, %v456_v10 }
  0x2b   : > { %2346 = vmatpush3.bf16.msra.mxu1 %v2544_v14  ;;  %2349 = vmatprep.mubr.msk.bf16.mxu1 %vm2649_vm0, %v2648_v1 }
  0x2c   : > { %2347 = vmatprep.subr.bf16.mxu1 %v2648_v1 }
  0x2d   : > { %2340 = vmatpush3.bf16.msra.mxu0 %v2535_v9  ;;  %v2548_v9 = vld [vmem:[%s3104_s3 + $0x18] sm:$0xff]  }
  0x2e   : > { %2353 = vmatprep.subr.bf16.mxu0 %v2648_v1 }
  0x2f   : > { %2348 = vmatpush3.bf16.msra.mxu1 %v2545_v19 }
  0x30   : > { %2342 = vmatmul.mubr.msk.bf16.vlgmr.msra.gmra.mxu0 %vm480_vm1, %v455_v4  ;;  %2361 = vmatprep.subr.bf16.mxu1 %v2648_v1 }
  0x31   : > { %2354 = vmatpush3.bf16.msra.mxu0 %v2536_v13  ;;  %2357 = vmatprep.mubr.msk.bf16.mxu0 %vm2649_vm0, %v2648_v1  ;;  %v2549_v13 = vld [vmem:[%s3104_s3 + $0x10] sm:$0xff]  }
  0x32   : > { %2355 = vmatprep.subr.bf16.mxu0 %v2648_v1  ;;  %2350 = vmatmul.mubr.msk.bf16.vlgmr.msra.gmra.mxu1 %vm480_vm1, %v456_v10 }
  0x33   : > { %2362 = vmatpush3.bf16.msra.mxu1 %v2546_v20  ;;  %2365 = vmatprep.mubr.msk.bf16.mxu1 %vm2649_vm0, %v2648_v1 }
  0x34   : > { %2363 = vmatprep.subr.bf16.mxu1 %v2648_v1 }
  0x35   : > { %2356 = vmatpush3.bf16.msra.mxu0 %v2537_v15 }
  0x36   : > { %2369 = vmatprep.subr.bf16.mxu0 %v2648_v1 }
  0x37   : > { %2364 = vmatpush3.bf16.msra.mxu1 %v2547_v21 }
  0x38   : > { %2358 = vmatmul.mubr.msk.bf16.vlgmr.msra.gmra.mxu0 %vm480_vm1, %v455_v4  ;;  %2377 = vmatprep.subr.bf16.mxu1 %v2648_v1 }
  0x39   : > { %2370 = vmatpush3.bf16.msra.mxu0 %v2538_v16  ;;  %2373 = vmatprep.mubr.msk.bf16.mxu0 %vm2649_vm0, %v2648_v1  ;;  %v2166_v16 = vld [vmem:[%s3109_s8 + $0x2] ss:$0 sm:$0xff] }
  0x3a   : > { %2371 = vmatprep.subr.bf16.mxu0 %v2648_v1  ;;  %2366 = vmatmul.mubr.msk.bf16.vlgmr.msra.gmra.mxu1 %vm480_vm1, %v456_v10 }
  0x3b   : > { %2379 = vmatprep.mubr.msk.bf16.mxu1 %vm2649_vm0, %v2648_v1 }
  0x3d   : > { %2372 = vmatpush3.bf16.msra.mxu0 %v2539_v17 }
  0x3e   : > { %2383 = vmatprep.subr.bf16.mxu0 %v2648_v1 }
  0x40   : > { %2374 = vmatmul.mubr.msk.bf16.vlgmr.msra.gmra.mxu0 %vm480_vm1, %v2865_v18 }
  0x41   : > { %2385 = vmatprep.mubr.msk.bf16.mxu0 %vm2649_vm0, %v2648_v1 }
  0xe0   : > { %v518_v23 = vpop.f32.mrf.mxu0 }
  0xe1   : > { %v519_v24 = vadd.f32 %v2126_v22, %v518_v23 }
  0xe2   : > { %v2311_v25 = vpop.f32.mrf.mxu0  ;;  %v584_v35 = vpop.f32.mrf.mxu1 }
  0xe3   : > { %v590_v26 = vpack.c.bf16 %v519_v24, %v519_v24  ;;  %v585_v38 = vadd.f32 %v2130_v32, %v584_v35  ;;  %v2184_v24 = vld [vmem:[%s3109_s8 + $0x3] ss:$0 sm:$0xff] }
  0xe4   : > { %v521_v27 = vpop.f32.mrf.mxu0  ;;  %v2319_v40 = vpop.f32.mrf.mxu1 }
  0xe5   : > { %592 = vst.msk [vmem:[#allocation2] sm:$0xf] %vm591_vm2, %v590_v26  ;;  %v593_v43 = vpack.c.bf16 %v585_v38, %v585_v38 }
  0xe6   : > { %v2312_v28 = vpop.f32.mrf.mxu0  ;;  %v587_v44 = vpop.f32.mrf.mxu1 }
  0xe7   : > { %594 = vst.msk [vmem:[#allocation3] sm:$0xf] %vm591_vm2, %v593_v43  ;;  %v2199_v44 = vld [vmem:[%s3105_s4 + $0x1] ss:$0 sm:$0xff] }
  0xe8   : > { %v654_v30 = vpop.f32.mrf.mxu0  ;;  %v2320_v47 = vpop.f32.mrf.mxu1 }
  0xe9   : > { %v655_v31 = vadd.f32 %v2139_v29, %v654_v30 }
  0xea   : > { %v2327_v33 = vpop.f32.mrf.mxu0  ;;  %v719_v51 = vpop.f32.mrf.mxu1 }
  0xeb   : > { %v725_v34 = vpack.c.bf16 %v655_v31, %v655_v31  ;;  %v720_v53 = vadd.f32 %v2148_v48, %v719_v51 }
  0xec   : > { %v657_v36 = vpop.f32.mrf.mxu0  ;;  %v1078_v37 = vld [vmem:[#allocation2] sm:$0xf]  ;;  %v2335_v54 = vpop.f32.mrf.mxu1 }
  0xed   : > { %727 = vst.msk [vmem:[#allocation2 + $0x4] sm:$0xf] %vm591_vm2, %v725_v34  ;;  %v1088_v39 = vsel %vm1083_vm3, %v1078_v37, 0  ;;  %v728_v57 = vpack.c.bf16 %v720_v53, %v720_v53 }
  0xee   : > { %v2328_v41 = vpop.f32.mrf.mxu0  ;;  %2378 = vmatpush3.bf16.xpose.msra.mxu1 %v1088_v39  ;;  %v722_v58 = vpop.f32.mrf.mxu1  ;;  %v1081_v59 = vld [vmem:[#allocation3] sm:$0xf] }
  0xef   : > { %2389 = vmatprep.subr.bf16.mxu1 %v2648_v1  ;;  %730 = vst.msk [vmem:[#allocation3 + $0x4] sm:$0xf] %vm591_vm2, %v728_v57  ;;  %v1145_v61 = vsel %vm1143_vm4, %v1081_v59, 0 }
  0xf0   : > { %v790_v45 = vpop.f32.mrf.mxu0  ;;  %v2336_v63 = vpop.f32.mrf.mxu1  ;;  %2384 = vmatpush3.bf16.msra.mxu0 %v1145_v61 }
  0xf1   : > { %v791_v46 = vadd.f32 %v2157_v42, %v790_v45  ;;  %2397 = vmatprep.subr.bf16.mxu0 %v2648_v1 }
  0xf2   : > { %v2343_v49 = vpop.f32.mrf.mxu0  ;;  %v855_v17 = vpop.f32.mrf.mxu1 }
  0xf3   : > { %v861_v50 = vpack.c.bf16 %v791_v46, %v791_v46  ;;  %v856_v19 = vadd.f32 %v2166_v16, %v855_v17 }
  0xf4   : > { %v793_v52 = vpop.f32.mrf.mxu0  ;;  %v2351_v20 = vpop.f32.mrf.mxu1  ;;  %v2203_v45 = vld [vmem:[#allocation2 + $0x4] sm:$0xf] }
  0xf5   : > { %863 = vst.msk [vmem:[#allocation2 + $0x8] sm:$0xf] %vm591_vm2, %v861_v50  ;;  %v864_v21 = vpack.c.bf16 %v856_v19, %v856_v19  ;;  %v1272_v48 = vsel %vm1083_vm3, %v2203_v45, 0  ;;  %v2550_v19 = vld [vmem:[%s3104_s3 + $0x28] sm:$0xff]  }
  0xf6   : > { %v2344_v55 = vpop.f32.mrf.mxu0  ;;  %v2204_v14 = vld [vmem:[#allocation3 + $0x4] sm:$0xf]  ;;  %v858_v22 = vpop.f32.mrf.mxu1 }
  0xf7   : > { %v1328_v15 = vsel %vm1143_vm4, %v2204_v14, 0  ;;  %866 = vst.msk [vmem:[#allocation3 + $0x8] sm:$0xf] %vm591_vm2, %v864_v21 }
  0xf8   : > { %v926_v60 = vpop.f32.mrf.mxu0  ;;  %v2352_v23 = vpop.f32.mrf.mxu1 }
  0xf9   : > { %v927_v62 = vadd.f32 %v2175_v56, %v926_v60  ;;  %v2551_v23 = vld [vmem:[%s3104_s3 + $0x20] sm:$0xff]  }
  0xfa   : > { %v2359_v0 = vpop.f32.mrf.mxu0  ;;  %v991_v25 = vpop.f32.mrf.mxu1 }
  0xfb   : > { %v997_v2 = vpack.c.bf16 %v927_v62, %v927_v62  ;;  %v992_v26 = vadd.f32 %v2184_v24, %v991_v25 }
  0xfc   : > { %v929_v3 = vpop.f32.mrf.mxu0  ;;  %v2367_v27 = vpop.f32.mrf.mxu1 }
  0xfd   : > { %999 = vst.msk [vmem:[#allocation2 + $0xc] sm:$0xf] %vm591_vm2, %v997_v2  ;;  %v1000_v28 = vpack.c.bf16 %v992_v26, %v992_v26  ;;  %v1192_v3 = vld [vmem:[%s3110_s9] sm:$0xf] }
  0xfe   : > { %v2360_v4 = vpop.f32.mrf.mxu0  ;;  %v994_v29 = vpop.f32.mrf.mxu1  ;;  %v2220_v24 = vld [vmem:[#allocation3 + $0x8] sm:$0xf] }
  0xff   : > { %1002 = vst.msk [vmem:[#allocation3 + $0xc] sm:$0xf] %vm591_vm2, %v1000_v28  ;;  %v1426_v4 = vsel %vm1143_vm4, %v1192_v3, 0  ;;  %v1603_v25 = vsel %vm1143_vm4, %v2220_v24, 0 }
 0x100   : > { %v1070_v6 = vpop.f32.mrf.mxu0  ;;  %v2368_v30 = vpop.f32.mrf.mxu1 }
 0x101   : > { %v1071_v7 = vadd.f32 %v2188_v5, %v1070_v6  ;;  %v2207_v5 = vld [vmem:[%s3110_s9 + $0x4] sm:$0xf] }
 0x102   : > { %v2375_v8 = vpop.f32.mrf.mxu0  ;;  %v1380_v6 = vsel %vm1143_vm4, %v2207_v5, 0  ;;  %v2230_v5 = vld [vmem:[%s3105_s4 + $0x3] ss:$0 sm:$0xff] }
 0x103   : > { %v1082_v10 = vpack.c.bf16 %v1071_v7, %v1071_v7 }
 0x104   : > { %v1073_v11 = vpop.f32.mrf.mxu0 }
 0x105   : > { %2380 = vmatmul.mubr.msk.bf16.vlgmr.msra.gmra.mxu1 %vm1083_vm3, %v1082_v10  ;;  %v2219_v11 = vld [vmem:[#allocation2 + $0x8] sm:$0xf] }
 0x106   : > { %v2376_v12 = vpop.f32.mrf.mxu0  ;;  %2390 = vmatpush3.bf16.msra.mxu1 %v2548_v9  ;;  %2393 = vmatprep.mubr.msk.bf16.mxu1 %vm2649_vm0, %v2648_v1 }
 0x107   : > { %2391 = vmatprep.subr.bf16.mxu1 %v2648_v1 }
 0x10a   : > { %2392 = vmatpush3.bf16.msra.mxu1 %v2549_v13  ;;  %v1547_v13 = vsel %vm1083_vm3, %v2219_v11, 0 }
 0x10b   : > { %2403 = vmatprep.subr.bf16.mxu1 %v2648_v1 }
 0x10d   : > { %2394 = vmatmul.mubr.msk.bf16.vlgmr.msra.gmra.mxu1 %vm480_vm1, %v2865_v18 }
 0x10e   : > { %2404 = vmatpush3.bf16.msra.mxu1 %v1328_v15  ;;  %2405 = vmatprep.mubr.msk.bf16.mxu1 %vm2649_vm0, %v2648_v1 }
 0x10f   : > { %2415 = vmatprep.subr.bf16.mxu1 %v2648_v1 }
 0x1c5   : > { %v1124_v31 = vpop.f32.mrf.mxu1 }
 0x1c6   : > { %v1130_v32 = vsel %vm1083_vm3, %v1124_v31, -inf }
 0x1c7   : > { %1131 = vmax.xlane.f32.xlu0 %v1130_v32  ;;  %v2381_v33 = vpop.f32.mrf.mxu1 }
 0x1c9   : > { %v1127_v34 = vpop.f32.mrf.mxu1 }
 0x1cb   : > { %v2382_v35 = vpop.f32.mrf.mxu1 }
 0x1cc   : > { %v2215_v35 = vld [vmem:[%s3105_s4 + $0x2] ss:$0 sm:$0xff] }
 0x1cd   : > { %v1255_v36 = vpop.f32.mrf.mxu1 }
 0x1ce   : > { %v1256_v47 = vadd.f32 %v2199_v44, %v1255_v36 }
 0x1cf   : > { %v2395_v37 = vpop.f32.mrf.mxu1 }
 0x1d0   : > { %v1267_v49 = vpack.c.bf16 %v1256_v47, %v1256_v47 }
 0x1d1   : > { %v1258_v38 = vpop.f32.mrf.mxu1 }
 0x1d3   : > { %v2396_v39 = vpop.f32.mrf.mxu1 }
 0x250   : > { %v1132_v40 = vpop.xlane.xlu0 %1131 }
 0x251   : > { %v1133_v41 = vsub.f32 %v1124_v31, %v1132_v40 }
 0x253   : > { %v1134_v42 = vmul.f32 1.442695, %v1133_v41 }
 0x255   : > { %2554 = vpow2.f32 %v1134_v42 }
 0x262   : > { %v2555_v43 = vpop.eup %2554 }
 0x263   : > { %v1139_v46 = vpack.c.bf16 %v2555_v43, %v2555_v43  ;;  %v1136_v2 = vsel %vm1083_vm3, %v2555_v43, 0.0 }
 0x265   : > { %2386 = vmatmul.mubr.msk.bf16.vlgmr.msra.gmra.mxu0 %vm1083_vm3, %v1139_v46 }
 0x266   : > { %2398 = vmatpush3.bf16.xpose.msra.mxu0 %v1272_v48  ;;  %2399 = vmatprep.mubr.msk.bf16.mxu0 %vm2649_vm0, %v2648_v1 }
 0x267   : > { %2409 = vmatprep.subr.bf16.mxu0 %v2648_v1 }
 0x26d   : > { %2400 = vmatmul.mubr.msk.bf16.vlgmr.msra.gmra.mxu0 %vm1083_vm3, %v1267_v49 }
 0x26e   : > { %2411 = vmatprep.mubr.msk.bf16.mxu0 %vm2649_vm0, %v2648_v1  ;;  %2410 = vmatpush3.bf16.msra.mxu0 %v1380_v6 }
 0x26f   : > { %2421 = vmatprep.subr.bf16.mxu0 %v2648_v1 }
 0x325   : > { %v1181_v50 = vpop.f32.mrf.mxu0 }
 0x327   : > { %v2387_v51 = vpop.f32.mrf.mxu0 }
 0x328   : > { %v2552_v51 = vld [vmem:[%s3104_s3 + $0x38] sm:$0xff]  }
 0x329   : > { %v1184_v52 = vpop.f32.mrf.mxu0 }
 0x32b   : > { %v2388_v53 = vpop.f32.mrf.mxu0 }
 0x32d   : > { %v1308_v54 = vpop.f32.mrf.mxu0 }
 0x32e   : > { %v1314_v55 = vsel %vm1083_vm3, %v1308_v54, -inf }
 0x32f   : > { %1315 = vmax.xlane.f32.xlu0 %v1314_v55  ;;  %v2401_v56 = vpop.f32.mrf.mxu0  ;;  %v2235_v55 = vld [vmem:[#allocation3 + $0xc] sm:$0xf] }
 0x330   : > { %v1833_v56 = vsel %vm1143_vm4, %v2235_v55, 0 }
 0x331   : > { %v1311_v57 = vpop.f32.mrf.mxu0 }
 0x332   : > { %v2223_v57 = vld [vmem:[%s3110_s9 + $0x8] sm:$0xf] }
 0x333   : > { %v2402_v58 = vpop.f32.mrf.mxu0 }
 0x334   : > { %v1655_v58 = vsel %vm1143_vm4, %v2223_v57, 0 }
 0x3b8   : > { %v1316_v59 = vpop.xlane.xlu0 %1315 }
 0x3b9   : > { %v1317_v60 = vsub.f32 %v1308_v54, %v1316_v59  ;;  %v2553_v54 = vld [vmem:[%s3104_s3 + $0x30] sm:$0xff]  }
 0x3bb   : > { %v1318_v61 = vmul.f32 1.442695, %v1317_v60 }
 0x3bd   : > { %2556 = vpow2.f32 %v1318_v61 }
 0x3ca   : > { %v2557_v62 = vpop.eup %2556 }
 0x3cb   : > { %v1320_v63 = vsel %vm1083_vm3, %v2557_v62, 0.0  ;;  %v1323_v0 = vpack.c.bf16 %v2557_v62, %v2557_v62 }
 0x3cc   : > { %1321 = vadd.xlane.f32.xlu1 %v1320_v63  ;;  %v2234_v63 = vld [vmem:[#allocation2 + $0xc] sm:$0xf] }
 0x3cd   : > { %2406 = vmatmul.mubr.msk.bf16.vlgmr.msra.gmra.mxu1 %vm1083_vm3, %v1323_v0  ;;  %v1777_v3 = vsel %vm1083_vm3, %v2234_v63, 0 }
 0x3ce   : > { %2417 = vmatprep.mubr.msk.bf16.mxu1 %vm2649_vm0, %v2648_v1  ;;  %2416 = vmatpush3.bf16.msra.mxu1 %v1426_v4 }
 0x3cf   : > { %2429 = vmatprep.subr.bf16.mxu1 %v2648_v1 }
 0x3d0   : > { %1137 = vadd.xlane.f32.xlu1 %v1136_v2 }
 0x455   : > { %v1322_v7 = vpop.xlane.xlu1 %1321 }
 0x459   : > { %v1138_v8 = vpop.xlane.xlu1 %1137 }
 0x45a   : > { %2558 = vrcp.f32 %v1138_v8 }
 0x45b   : > { %2560 = vrcp.f32 %v1322_v7 }
 0x467   : > { %v2559_v9 = vpop.eup %2558 }
 0x468   : > { %v1188_v10 = vmul.f32 %v2559_v9, %v1181_v50  ;;  %v2561_v14 = vpop.eup %2560 }
 0x46a   : > { %v1189_v12 = vpack.c.bf16 %v1188_v10, %v1188_v10 }
 0x46c   : > { %2418 = vmatmul.mubr.msk.bf16.vlgmr.msra.gmra.mxu1 %vm1083_vm3, %v1189_v12 }
 0x46d   : > { %2430 = vmatpush3.bf16.xpose.msra.mxu1 %v1547_v13  ;;  %2431 = vmatprep.mubr.msk.bf16.mxu1 %vm2649_vm0, %v2648_v1 }
 0x46e   : > { %2441 = vmatprep.subr.bf16.mxu1 %v2648_v1 }
 0x48d   : > { %v1364_v15 = vpop.f32.mrf.mxu1 }
 0x48e   : > { %v1371_v16 = vmul.f32 %v2561_v14, %v1364_v15 }
 0x48f   : > { %v2407_v17 = vpop.f32.mrf.mxu1 }
 0x490   : > { %v1372_v20 = vpack.c.bf16 %v1371_v16, %v1371_v16 }
 0x491   : > { %v1367_v21 = vpop.f32.mrf.mxu1 }
 0x492   : > { %2412 = vmatmul.mubr.msk.bf16.vlgmr.msra.gmra.mxu0 %vm1083_vm3, %v1372_v20 }
 0x493   : > { %2422 = vmatpush3.bf16.msra.mxu0 %v2550_v19  ;;  %v2408_v22 = vpop.f32.mrf.mxu1  ;;  %2425 = vmatprep.mubr.msk.bf16.mxu0 %vm2649_vm0, %v2648_v1 }
 0x494   : > { %2423 = vmatprep.subr.bf16.mxu0 %v2648_v1 }
 0x497   : > { %2424 = vmatpush3.bf16.msra.mxu0 %v2551_v23 }
 0x498   : > { %2435 = vmatprep.subr.bf16.mxu0 %v2648_v1 }
 0x49a   : > { %2426 = vmatmul.mubr.msk.bf16.vlgmr.msra.gmra.mxu0 %vm480_vm1, %v2865_v18 }
 0x49b   : > { %2436 = vmatpush3.bf16.msra.mxu0 %v1603_v25  ;;  %2437 = vmatprep.mubr.msk.bf16.mxu0 %vm2649_vm0, %v2648_v1 }
 0x49c   : > { %2447 = vmatprep.subr.bf16.mxu0 %v2648_v1 }
 0x52c   : > { %v1462_v26 = vpop.f32.mrf.mxu1 }
 0x52e   : > { %v2419_v27 = vpop.f32.mrf.mxu1 }
 0x530   : > { %v1465_v28 = vpop.f32.mrf.mxu1 }
 0x531   : > { %v2238_v28 = vld [vmem:[%s3110_s9 + $0xc] sm:$0xf] }
 0x532   : > { %v2420_v29 = vpop.f32.mrf.mxu1 }
 0x533   : > { %v1885_v29 = vsel %vm1143_vm4, %v2238_v28, 0 }
 0x552   : > { %v1416_v30 = vpop.f32.mrf.mxu0 }
 0x553   : > { %v2996_v31 = vadd.f32 %v1462_v26, %v1416_v30 }
 0x554   : > { %v2413_v32 = vpop.f32.mrf.mxu0 }
 0x556   : > { %v1419_v33 = vpop.f32.mrf.mxu0 }
 0x558   : > { %v2414_v34 = vpop.f32.mrf.mxu0 }
 0x55a   : > { %v1530_v36 = vpop.f32.mrf.mxu0 }
 0x55b   : > { %v1531_v37 = vadd.f32 %v2215_v35, %v1530_v36 }
 0x55c   : > { %v2427_v38 = vpop.f32.mrf.mxu0 }
 0x55d   : > { %v1542_v39 = vpack.c.bf16 %v1531_v37, %v1531_v37 }
 0x55e   : > { %v1533_v40 = vpop.f32.mrf.mxu0 }
 0x55f   : > { %2432 = vmatmul.mubr.msk.bf16.vlgmr.msra.gmra.mxu1 %vm1083_vm3, %v1542_v39  ;;  %v2240_v39 = vld [vmem:[%s3111_s10] ss:$0 sm:$0xff] }
 0x560   : > { %v2428_v41 = vpop.f32.mrf.mxu0  ;;  %2443 = vmatprep.mubr.msk.bf16.mxu1 %vm2649_vm0, %v2648_v1  ;;  %2442 = vmatpush3.bf16.msra.mxu1 %v1655_v58 }
 0x561   : > { %2455 = vmatprep.subr.bf16.mxu1 %v2648_v1 }
 0x61f   : > { %v1583_v42 = vpop.f32.mrf.mxu1 }
 0x620   : > { %v1589_v43 = vsel %vm1083_vm3, %v1583_v42, -inf }
 0x621   : > { %1590 = vmax.xlane.f32.xlu0 %v1589_v43  ;;  %v2433_v44 = vpop.f32.mrf.mxu1 }
 0x623   : > { %v1586_v45 = vpop.f32.mrf.mxu1 }
 0x625   : > { %v2434_v46 = vpop.f32.mrf.mxu1 }
 0x6aa   : > { %v1591_v47 = vpop.xlane.xlu0 %1590 }
 0x6ab   : > { %v1592_v48 = vsub.f32 %v1583_v42, %v1591_v47 }
 0x6ad   : > { %v1593_v49 = vmul.f32 1.442695, %v1592_v48 }
 0x6af   : > { %2562 = vpow2.f32 %v1593_v49 }
 0x6bc   : > { %v2563_v50 = vpop.eup %2562 }
 0x6bd   : > { %v1595_v52 = vsel %vm1083_vm3, %v2563_v50, 0.0  ;;  %v1598_v53 = vpack.c.bf16 %v2563_v50, %v2563_v50 }
 0x6be   : > { %1596 = vadd.xlane.f32.xlu1 %v1595_v52 }
 0x6bf   : > { %2438 = vmatmul.mubr.msk.bf16.vlgmr.msra.gmra.mxu0 %vm1083_vm3, %v1598_v53 }
 0x6c0   : > { %2448 = vmatpush3.bf16.msra.mxu0 %v2552_v51  ;;  %2451 = vmatprep.mubr.msk.bf16.mxu0 %vm2649_vm0, %v2648_v1 }
 0x6c1   : > { %2449 = vmatprep.subr.bf16.mxu0 %v2648_v1 }
 0x6c4   : > { %2450 = vmatpush3.bf16.msra.mxu0 %v2553_v54 }
 0x6c5   : > { %2461 = vmatprep.subr.bf16.mxu0 %v2648_v1 }
 0x6c7   : > { %2452 = vmatmul.mubr.msk.bf16.vlgmr.msra.gmra.mxu0 %vm480_vm1, %v2865_v18 }
 0x6c8   : > { %2462 = vmatpush3.bf16.msra.mxu0 %v1833_v56  ;;  %2463 = vmatprep.mubr.msk.bf16.mxu0 %vm2649_vm0, %v2648_v1 }
 0x747   : > { %v1597_v59 = vpop.xlane.xlu1 %1596 }
 0x748   : > { %2564 = vrcp.f32 %v1597_v59 }
 0x755   : > { %v2565_v60 = vpop.eup %2564 }
 0x77f   : > { %v1639_v61 = vpop.f32.mrf.mxu0 }
 0x780   : > { %v1646_v18 = vmul.f32 %v2565_v60, %v1639_v61 }
 0x781   : > { %v2439_v62 = vpop.f32.mrf.mxu0 }
 0x782   : > { %v1647_v0 = vpack.c.bf16 %v1646_v18, %v1646_v18 }
 0x783   : > { %v1642_v2 = vpop.f32.mrf.mxu0 }
 0x784   : > { %2444 = vmatmul.mubr.msk.bf16.vlgmr.msra.gmra.mxu1 %vm1083_vm3, %v1647_v0 }
 0x785   : > { %2456 = vmatpush3.bf16.xpose.msra.mxu1 %v1777_v3  ;;  %v2440_v4 = vpop.f32.mrf.mxu0  ;;  %2457 = vmatprep.mubr.msk.bf16.mxu1 %vm2649_vm0, %v2648_v1 }
 0x786   : > { %2467 = vmatprep.subr.bf16.mxu1 %v2648_v1 }
 0x787   : > { %v1760_v6 = vpop.f32.mrf.mxu0 }
 0x788   : > { %v1761_v7 = vadd.f32 %v2230_v5, %v1760_v6 }
 0x789   : > { %v2453_v8 = vpop.f32.mrf.mxu0 }
 0x78a   : > { %v1772_v9 = vpack.c.bf16 %v1761_v7, %v1761_v7 }
 0x78b   : > { %v1763_v10 = vpop.f32.mrf.mxu0 }
 0x78c   : > { %2458 = vmatmul.mubr.msk.bf16.vlgmr.msra.gmra.mxu1 %vm1083_vm3, %v1772_v9 }
 0x78d   : > { %v2454_v11 = vpop.f32.mrf.mxu0  ;;  %2469 = vmatprep.mubr.msk.bf16.mxu1 %vm2649_vm0, %v2648_v1  ;;  %2468 = vmatpush3.bf16.msra.mxu1 %v1885_v29 }
 0x844   : > { %v1691_v12 = vpop.f32.mrf.mxu1 }
 0x845   : > { %v1697_v13 = vadd.f32 %v1691_v12, %v2996_v31 }
 0x846   : > { %v2445_v14 = vpop.f32.mrf.mxu1 }
 0x848   : > { %v1694_v15 = vpop.f32.mrf.mxu1 }
 0x84a   : > { %v2446_v16 = vpop.f32.mrf.mxu1 }
 0x84c   : > { %v1813_v17 = vpop.f32.mrf.mxu1 }
 0x84d   : > { %v1819_v19 = vsel %vm1083_vm3, %v1813_v17, -inf }
 0x84e   : > { %1820 = vmax.xlane.f32.xlu0 %v1819_v19  ;;  %v2459_v20 = vpop.f32.mrf.mxu1 }
 0x850   : > { %v1816_v21 = vpop.f32.mrf.mxu1 }
 0x852   : > { %v2460_v22 = vpop.f32.mrf.mxu1 }
 0x8d7   : > { %v1821_v23 = vpop.xlane.xlu0 %1820 }
 0x8d8   : > { %v1822_v24 = vsub.f32 %v1813_v17, %v1821_v23 }
 0x8da   : > { %v1823_v25 = vmul.f32 1.442695, %v1822_v24 }
 0x8dc   : > { %2566 = vpow2.f32 %v1823_v25 }
 0x8e9   : > { %v2567_v26 = vpop.eup %2566 }
 0x8ea   : > { %v1825_v1 = vsel %vm1083_vm3, %v2567_v26, 0.0  ;;  %v1828_v27 = vpack.c.bf16 %v2567_v26, %v2567_v26 }
 0x8eb   : > { %1826 = vadd.xlane.f32.xlu1 %v1825_v1 }
 0x8ec   : > { %2464 = vmatmul.mubr.msk.bf16.vlgmr.msra.gmra.mxu0 %vm1083_vm3, %v1828_v27 }
 0x974   : > { %v1827_v30 = vpop.xlane.xlu1 %1826 }
 0x975   : > { %2568 = vrcp.f32 %v1827_v30 }
 0x982   : > { %v2569_v31 = vpop.eup %2568 }
 0x9ac   : > { %v1869_v32 = vpop.f32.mrf.mxu0 }
 0x9ad   : > { %v1876_v33 = vmul.f32 %v2569_v31, %v1869_v32 }
 0x9ae   : > { %v2465_v34 = vpop.f32.mrf.mxu0 }
 0x9af   : > { %v1877_v35 = vpack.c.bf16 %v1876_v33, %v1876_v33 }
 0x9b0   : > { %v1872_v36 = vpop.f32.mrf.mxu0 }
 0x9b1   : > { %2470 = vmatmul.mubr.msk.bf16.vlgmr.msra.gmra.mxu1 %vm1083_vm3, %v1877_v35 }
 0x9b2   : > { %v2466_v37 = vpop.f32.mrf.mxu0 }
 0xa71   : > { %v1921_v38 = vpop.f32.mrf.mxu1 }
 0xa72   : > { %v1927_v40 = vadd.f32 %v1921_v38, %v1697_v13 }
 0xa73   : > { %v2471_v41 = vpop.f32.mrf.mxu1 }
 0xa74   : > { %v1935_v42 = vadd.f32 %v2240_v39, %v1927_v40 }
 0xa75   : > { %v1924_v43 = vpop.f32.mrf.mxu1 }
 0xa76   : > { %1936 = vst [vmem:[%s432_s13] sm:$0xff] %v1935_v42 }
 0xa77   : > { %v2472_v44 = vpop.f32.mrf.mxu1 }
 0xa78   : > { %2583 = shalt.err (!%p2580_p5)
}
 0xa79   : > { %s2584_s12 = scalar_lea.hbm %s3055_s16, 128  ;;  %s2588_s15 = scalar_lea.hbm %s3112_s11, 256 }
 0xa7a   : > { %p2585_p6 = scmp.ne.s32.totalorder %s3055_s16, %s2584_s12  ;;  %p2589_p10 = scmp.lt.s32.totalorder %s3055_s16, %s3112_s11 }
 0xa7b   : > { %p2590_p11 = scmp.lt.s32.totalorder %s2588_s15, %s2584_s12 }
 0xa7c   : > { %p2586_p7 = pnand %p2585_p6, %p2751_p4 }
 0xa7d   : > { %p2591_p12 = por %p2590_p11, %p2589_p10 }
 0xa7e   : > { %p2587_p9 = pneg %p2586_p7 }
 0xa80   : > { %p2592_p13 = pnand %p2591_p12, %p2587_p9 }
 0xa82   : > { %2595 = shalt.err (!%p2592_p13)
}
 0xa83   : > { %2473 = dma.vmem_to_hbm [thread:$0]  (%p2751_p4), %s3057_s1, 128, %s3055_s16, %s1938_s28  }
 0xa84 PF: > { %p2479_p0 = scmp.ge.s32.totalorder %s2646_s22, 2  ;;  %s1964_s20 = sand.u32 1, %s2626_s17  }
 0xa85   : > { %s1965_s0 = scalar_lea.sflag [#allocation6], %s1964_s20 }
 0xa86   : > { %p2476_p1 = pnand %p2479_p0, %p2758_p8 }
 0xa88   : > { %p2477_p2 = pneg %p2476_p1 }
 0xa8a   : > { %2621 = dma.done.wait (%p2477_p2), %s1965_s0, 128  }
 0xa8b   : > { %2623 = vsyncadd (%p2477_p2), %s1965_s0, 4294967168  ;;  %s24_s22 = sadd.s32 1, %s2646_s22   ;;  %s3119_s17 = smov %s2630_s18 }
 0xa8c   : > { %p21_p3 = scmp.ge.s32.totalorder %s24_s22, 4   ;;  %s3120_s18 = smov %s2634_s19 }
 0xa8d   : > { %s3121_s19 = smov %s2764_s30  ;;  %s3122_s20 = smov %s2642_s21 }
 0xa8e   : > { %s3123_s21 = smov %s3125_s25  ;;  %23 = sbr.rel (!%p21_p3) target bundleno = 7 (0x7), region = 147 }
 0xa93   :  { %1970 = vsyncpa [#allocation6], 1 }
 0xa94   :  { %1972 = vsyncpa [#allocation6 + $0x1], 1 }

</bundles_post_ra>
